<compile_context>
chip_gen: v7x
topology: tpu7x:2x2x1
jax: 0.10.0
libtpu: 0.0.40
codegen_flags: <defaults>
</compile_context>

<pallas_src>
import functools

import jax
import jax.numpy as jnp
from jax import lax
from jax.experimental import pallas as pl
from jax.experimental.pallas import tpu as pltpu

_BN_EPS = 1e-5


def _ceil_to(x, m):
    return -(-x // m) * m


def _mosaic_params(semantics, working_set_bytes):
    """Explicit VMEM budget (headroom over the estimated working set, capped
    below v7x's 64 MiB physical VMEM)."""
    vmem = int(min(max(3 * working_set_bytes, 8 * 2**20), 56 * 2**20))
    return pltpu.CompilerParams(dimension_semantics=semantics,
                                vmem_limit_bytes=vmem)


# ------------------------------ Pallas kernels ------------------------------

def _conv1x1_bn_kernel(*refs, bn_relu_prologue, m_valid, tm):
    """Fused 1x1 conv:  [relu(a*scale_in + bias_in)] @ W  on the MXU (bf16 in,
    f32 accumulation) plus per-block partial sum / sum-of-squares for this
    layer's BatchNorm.  The prologue is skipped when it is the identity."""
    if bn_relu_prologue:
        a_ref, s_ref, b_ref, w_ref, o_ref, sum_ref, sq_ref = refs
        a = a_ref[...].astype(jnp.float32) * s_ref[...] + b_ref[...]
        a = jnp.maximum(a, 0.0)
        if m_valid is not None:          # zero padded rows (keeps stats exact)
            rows = pl.program_id(0) * tm + lax.broadcasted_iota(
                jnp.int32, (tm, 1), 0)
            a = jnp.where(rows < m_valid, a, 0.0)
        a = a.astype(jnp.bfloat16)
    else:
        a_ref, w_ref, o_ref, sum_ref, sq_ref = refs
        a = a_ref[...]                   # already bf16, padded rows already zero
    acc = jnp.dot(a, w_ref[...], preferred_element_type=jnp.float32)
    o_ref[...] = acc.astype(o_ref.dtype)
    cout = acc.shape[1]
    sum_ref[...] = jnp.sum(acc, axis=0, keepdims=True).reshape(1, 1, cout)
    sq_ref[...] = jnp.sum(acc * acc, axis=0, keepdims=True).reshape(1, 1, cout)


def _conv3x3_bn_kernel(x_ref, s_ref, b_ref, w_ref, o_ref, sum_ref, sq_ref,
                       ypad_ref, *, H, W):
    """Fused 3x3 / stride-1 / pad-1 conv for ONE image of the batch.

    x_ref        : (1, H, W, C1p)   raw conv1 output (pre-BN), bf16
    s_ref/b_ref  : (1, 1, C1p)      folded BN1 scale / bias (f32)
    w_ref        : (3, 3*C1p, C2p)  bf16 weights grouped by kernel row di
    o_ref        : (1, H*W, C2p)    bf16 raw conv2 output
    sum_ref/sq_ref : (1, 1, C2p)    per-image partial BN2 statistics (f32)
    ypad_ref     : (H+2, W+2, C1p)  f32 zero-haloed scratch
    """
    C2p = w_ref.shape[2]
    # BN1 + ReLU prologue, computed once in f32.
    y = jnp.maximum(x_ref[0].astype(jnp.float32) * s_ref[...] + b_ref[...], 0.0)
    # Zero-extended copy: plane 0 / H+1 and columns >= W stay zero, which IS the
    # conv's zero padding (no per-tap masks, no mask DMA).  Re-zeroed every step
    # so the batch grid axis can stay "parallel" (megacore-safe).
    ypad_ref[...] = jnp.zeros(ypad_ref.shape, ypad_ref.dtype)
    ypad_ref[1:H + 1, 0:W, :] = y
    yp = ypad_ref[...]
    # dj-shifted copies; the roll wrap-around lands on the zero columns.
    shifted = (jnp.roll(yp, 1, axis=1), yp, jnp.roll(yp, -1, axis=1))
    acc = jnp.zeros((H * W, C2p), jnp.float32)
    for di in range(3):                      # 3 MXU matmuls with K = 3*C1p
        a = jnp.concatenate([sw[di:di + H, 0:W, :] for sw in shifted], axis=-1)
        a = a.reshape(H * W, a.shape[-1]).astype(jnp.bfloat16)
        acc = acc + jnp.dot(a, w_ref[di], preferred_element_type=jnp.float32)
    o_ref[...] = acc.reshape(1, H * W, C2p).astype(o_ref.dtype)
    sum_ref[...] = jnp.sum(acc, axis=0, keepdims=True).reshape(1, 1, C2p)
    sq_ref[...] = jnp.sum(acc * acc, axis=0, keepdims=True).reshape(1, 1, C2p)
    # TODO(synk): for very large feature maps, add a second grid axis over H with
    # a +-1 row halo instead of holding the whole image in VMEM.


def _gap_bn_kernel(x_ref, s_ref, b_ref, o_ref):
    """Global average pool of relu(bn3(conv3_raw)) over H*W for one image."""
    y = jnp.maximum(x_ref[...].astype(jnp.float32) * s_ref[...] + b_ref[...], 0.0)
    o_ref[...] = jnp.mean(y, axis=1, keepdims=True)      # (1, 1, C3p)


def _se_mlp_kernel(p_ref, w1_ref, w2_ref, g_ref):
    """SE excitation: FC1 -> ReLU -> FC2 -> ReLU -> Sigmoid (per the spec)."""
    h = jnp.dot(p_ref[...].astype(jnp.bfloat16), w1_ref[...],
                preferred_element_type=jnp.float32)
    h = jnp.maximum(h, 0.0)
    z = jnp.dot(h.astype(jnp.bfloat16), w2_ref[...],
                preferred_element_type=jnp.float32)
    z = jnp.maximum(z, 0.0)                 # extra ReLU before Sigmoid (spec)
    g_ref[...] = 1.0 / (1.0 + jnp.exp(-z))  # sigmoid on the EUP


def _se_residual_kernel(x_ref, s3_ref, b3_ref, g_ref, sc_ref, ssc_ref, bsc_ref,
                        o_ref):
    """out = relu( relu(bn3(conv3_raw)) * gate + bn_sc(shortcut_raw) )."""
    y = jnp.maximum(x_ref[...].astype(jnp.float32) * s3_ref[...] + b3_ref[...],
                    0.0)
    sc = sc_ref[...].astype(jnp.float32) * ssc_ref[...] + bsc_ref[...]
    o_ref[...] = jnp.maximum(y * g_ref[...] + sc, 0.0)


# ------------------------------- wrappers ------------------------------------

def _bn_fold(sum_blocks, sq_blocks, count, gamma, beta):
    """Train-mode BatchNorm (biased variance) folded into scale/bias from the
    per-block partial statistics."""
    s = jnp.sum(sum_blocks[:, 0, :], axis=0)
    q = jnp.sum(sq_blocks[:, 0, :], axis=0)
    mean = s / count
    var = jnp.maximum(q / count - mean * mean, 0.0)
    scale = gamma * lax.rsqrt(var + _BN_EPS)
    bias = beta - mean * scale
    return scale.reshape(1, -1), bias.reshape(1, -1)


def conv1x1_bn(a, w, gamma, beta, *, scale_in=None, bias_in=None, tm=512):
    """a: (M, K) bf16 raw activations of the previous layer.
    Returns (raw_out bf16 (Mp, Cout), scale (1, Cout), bias (1, Cout))."""
    M, K = a.shape
    Cout = w.shape[1]
    tm = min(tm, _ceil_to(M, 8))
    Mp = _ceil_to(M, tm)
    a_p = a if Mp == M else jnp.pad(a, ((0, Mp - M), (0, 0)))
    nb = Mp // tm
    prologue = scale_in is not None

    kernel = functools.partial(_conv1x1_bn_kernel, bn_relu_prologue=prologue,
                               m_valid=None if Mp == M else M, tm=tm)
    in_specs = [pl.BlockSpec((tm, K), lambda i: (i, 0))]
    operands = [a_p]
    if prologue:
        in_specs += [pl.BlockSpec((1, K), lambda i: (0, 0)),
                     pl.BlockSpec((1, K), lambda i: (0, 0))]
        operands += [scale_in, bias_in]
    in_specs.append(pl.BlockSpec((K, Cout), lambda i: (0, 0)))
    operands.append(w)

    ws = (2 * tm * K * 2 + K * Cout * 2 + 2 * tm * Cout * 2
          + tm * Cout * 4 + 8 * Cout * 4 + (2 * K * 4 if prologue else 0))
    out, sums, sqs = pl.pallas_call(
        kernel,
        out_shape=(jax.ShapeDtypeStruct((Mp, Cout), jnp.bfloat16),
                   jax.ShapeDtypeStruct((nb, 1, Cout), jnp.float32),
                   jax.ShapeDtypeStruct((nb, 1, Cout), jnp.float32)),
        grid=(nb,),
        in_specs=in_specs,
        out_specs=(pl.BlockSpec((tm, Cout), lambda i: (i, 0)),
                   pl.BlockSpec((1, 1, Cout), lambda i: (i, 0, 0)),
                   pl.BlockSpec((1, 1, Cout), lambda i: (i, 0, 0))),
        compiler_params=_mosaic_params(("parallel",), ws),
    )(*operands)
    scale, bias = _bn_fold(sums, sqs, M, gamma, beta)
    return out, scale, bias


def conv3x3_bn(x_nhwc, scale_in, bias_in, w_grouped, gamma, beta):
    """x_nhwc: (N, H, W, C1p) raw conv1 output (bf16).  3x3 / stride 1 / pad 1."""
    N, H, W, C1p = x_nhwc.shape
    C2p = w_grouped.shape[2]
    s_in = scale_in.reshape(1, 1, C1p)
    b_in = bias_in.reshape(1, 1, C1p)
    ws = (2 * H * W * C1p * 2 + 3 * 3 * C1p * C2p * 2 + 2 * H * W * C2p * 2
          + 4 * (H + 2) * (W + 2) * C1p * 4 + 3 * H * W * 3 * C1p * 4
          + 2 * H * W * C2p * 4)
    out, sums, sqs = pl.pallas_call(
        functools.partial(_conv3x3_bn_kernel, H=H, W=W),
        out_shape=(jax.ShapeDtypeStruct((N, H * W, C2p), jnp.bfloat16),
                   jax.ShapeDtypeStruct((N, 1, C2p), jnp.float32),
                   jax.ShapeDtypeStruct((N, 1, C2p), jnp.float32)),
        grid=(N,),
        in_specs=[pl.BlockSpec((1, H, W, C1p), lambda n: (n, 0, 0, 0)),
                  pl.BlockSpec((1, 1, C1p), lambda n: (0, 0, 0)),
                  pl.BlockSpec((1, 1, C1p), lambda n: (0, 0, 0)),
                  pl.BlockSpec((3, 3 * C1p, C2p), lambda n: (0, 0, 0))],
        out_specs=(pl.BlockSpec((1, H * W, C2p), lambda n: (n, 0, 0)),
                   pl.BlockSpec((1, 1, C2p), lambda n: (n, 0, 0)),
                   pl.BlockSpec((1, 1, C2p), lambda n: (n, 0, 0))),
        scratch_shapes=[pltpu.VMEM((H + 2, W + 2, C1p), jnp.float32)],
        compiler_params=_mosaic_params(("parallel",), ws),
    )(x_nhwc, s_in, b_in, w_grouped)
    scale, bias = _bn_fold(sums, sqs, N * H * W, gamma, beta)
    return out, scale, bias


def gap_bn(x3d, s3, b3):
    """Global average pool of relu(bn3(x)) over the HW axis."""
    N, HW, C = x3d.shape
    ws = 2 * HW * C * 2 + 8 * C * 4 + HW * C * 4
    pooled = pl.pallas_call(
        _gap_bn_kernel,
        out_shape=jax.ShapeDtypeStruct((N, 1, C), jnp.float32),
        grid=(N,),
        in_specs=[pl.BlockSpec((1, HW, C), lambda n: (n, 0, 0)),
                  pl.BlockSpec((1, 1, C), lambda n: (0, 0, 0)),
                  pl.BlockSpec((1, 1, C), lambda n: (0, 0, 0))],
        out_specs=pl.BlockSpec((1, 1, C), lambda n: (n, 0, 0)),
        compiler_params=_mosaic_params(("parallel",), ws),
    )(x3d, s3, b3)
    return pooled.reshape(N, C)


def se_mlp(pooled, w1, w2):
    """SE excitation MLP (tiny, whole-block; batch rows padded to 8)."""
    N, C = pooled.shape
    Np = max(8, _ceil_to(N, 8))
    pooled_p = pooled if Np == N else jnp.pad(pooled, ((0, Np - N), (0, 0)))
    gate = pl.pallas_call(
        _se_mlp_kernel,
        out_shape=jax.ShapeDtypeStruct((Np, C), jnp.float32),
    )(pooled_p, w1, w2)
    return gate[:N]


def se_residual(x3d, s3, b3, gate3d, sc3d, ssc, bsc):
    N, HW, C = x3d.shape
    thw = 512 if (HW > 512 and HW % 512 == 0) else HW
    ws = 2 * (2 * thw * C * 2 + thw * C * 4) + 12 * C * 4
    return pl.pallas_call(
        _se_residual_kernel,
        out_shape=jax.ShapeDtypeStruct((N, HW, C), jnp.float32),
        grid=(N, HW // thw),
        in_specs=[pl.BlockSpec((1, thw, C), lambda n, t: (n, t, 0)),
                  pl.BlockSpec((1, 1, C), lambda n, t: (0, 0, 0)),
                  pl.BlockSpec((1, 1, C), lambda n, t: (0, 0, 0)),
                  pl.BlockSpec((1, 1, C), lambda n, t: (n, 0, 0)),
                  pl.BlockSpec((1, thw, C), lambda n, t: (n, t, 0)),
                  pl.BlockSpec((1, 1, C), lambda n, t: (0, 0, 0)),
                  pl.BlockSpec((1, 1, C), lambda n, t: (0, 0, 0))],
        out_specs=pl.BlockSpec((1, thw, C), lambda n, t: (n, t, 0)),
        compiler_params=_mosaic_params(("parallel", "parallel"), ws),
    )(x3d, s3, b3, gate3d, sc3d, ssc, bsc)


# ------------------------------ forward pass ---------------------------------

def bottleneck_forward(x_nchw, params, *, stride, first, out_channels):
    x = jnp.transpose(x_nchw, (0, 2, 3, 1))               # NCHW -> NHWC
    xs = x[:, ::stride, ::stride, :]                       # 1x1 conv stride
    N, Ho, Wo, Cin = xs.shape
    M = N * Ho * Wo
    a0 = xs.reshape(M, Cin).astype(jnp.bfloat16)

    # conv1 (1x1, stride) + BN1 batch stats (identity prologue skipped).
    out1, s1, b1 = conv1x1_bn(a0, params["w1"], params["bn1_g"], params["bn1_b"])
    out1 = out1 if out1.shape[0] == M else out1[:M]
    C1p = out1.shape[1]

    # conv2 (3x3, pad 1) with fused BN1+ReLU prologue + BN2 stats.
    out2, s2, b2 = conv3x3_bn(out1.reshape(N, Ho, Wo, C1p), s1, b1,
                              params["w2"], params["bn2_g"], params["bn2_b"])
    C2p = out2.shape[2]

    # conv3 (1x1) with fused BN2+ReLU prologue + BN3 stats.
    out3, s3, b3 = conv1x1_bn(out2.reshape(M, C2p), params["w3"],
                              params["bn3_g"], params["bn3_b"],
                              scale_in=s2, bias_in=b2)
    out3 = out3 if out3.shape[0] == M else out3[:M]
    C3p = out3.shape[1]

    # shortcut branch
    if first:
        sc, ssc, bsc = conv1x1_bn(a0, params["wsc"],
                                  params["bnsc_g"], params["bnsc_b"])
        sc = sc if sc.shape[0] == M else sc[:M]
    else:
        if stride != 1 or Cin != out_channels:
            raise ValueError("identity shortcut needs stride == 1 and "
                             "in_channel == channel3")
        sc = a0 if Cin == C3p else jnp.pad(a0, ((0, 0), (0, C3p - Cin)))
        ssc = jnp.ones((1, C3p), jnp.float32)
        bsc = jnp.zeros((1, C3p), jnp.float32)

    out3_3d = out3.reshape(N, Ho * Wo, C3p)
    sc_3d = sc.reshape(N, Ho * Wo, C3p)
    s3_3, b3_3 = s3.reshape(1, 1, C3p), b3.reshape(1, 1, C3p)

    # SE squeeze (GAP fused with BN3+ReLU) and excitation MLP.
    pooled = gap_bn(out3_3d, s3_3, b3_3)                       # (N, C3p)
    gate = se_mlp(pooled, params["w_se1"], params["w_se2"])    # (N, C3p)

    # relu(bn3(conv3)) * gate + bn_sc(shortcut), final ReLU.
    out = se_residual(out3_3d, s3_3, b3_3, gate.reshape(N, 1, C3p), sc_3d,
                      ssc.reshape(1, 1, C3p), bsc.reshape(1, 1, C3p))
    out = out.reshape(N, Ho, Wo, C3p)[..., :out_channels]
    return jnp.transpose(out, (0, 3, 1, 2))                   # back to NCHW


# ------------------------------ parameters ------------------------------------

def init_bottleneck_params(in_channel, channels, r, seed=0):
    c1, c2, c3 = channels
    cr = max(c3 // r, 1)
    C1p, C2p, C3p, CRp = (_ceil_to(c, 128) for c in (c1, c2, c3, cr))
    ks = jax.random.split(jax.random.PRNGKey(seed), 6)

    def norm(k, shape, scale=0.1):
        return scale * jax.random.normal(k, shape, jnp.float32)

    # PyTorch OIHW conv weights, refolded to matmul form, padded to 128 lanes,
    # cast once to bf16.
    w1_t = norm(ks[0], (c1, in_channel, 1, 1))
    w2_t = norm(ks[1], (c2, c1, 3, 3))
    w3_t = norm(ks[2], (c3, c2, 1, 1))
    wsc_t = norm(ks[3], (c3, in_channel, 1, 1))
    wse1_t = norm(ks[4], (cr, c3, 1, 1))
    wse2_t = norm(ks[5], (c3, cr, 1, 1))

    def mat1x1(w, kin, kin_p, cout, cout_p):     # (O, I, 1, 1) -> (Ip, Op)
        m = jnp.zeros((kin_p, cout_p), jnp.float32)
        return m.at[:kin, :cout].set(jnp.transpose(w[:, :, 0, 0], (1, 0)))

    # 3x3 weights grouped by kernel row di: rows [dj*C1p + ic], tap = (di, dj).
    w2 = jnp.zeros((3, 3 * C1p, C2p), jnp.float32)
    for di in range(3):
        for dj in range(3):
            w2 = w2.at[di, dj * C1p:dj * C1p + c1, :c2].set(
                jnp.transpose(w2_t[:, :, di, dj], (1, 0)))

    def bn(c, cp):
        return (jnp.zeros((cp,), jnp.float32).at[:c].set(1.0),
                jnp.zeros((cp,), jnp.float32))

    bn1_g, bn1_b = bn(c1, C1p)
    bn2_g, bn2_b = bn(c2, C2p)
    bn3_g, bn3_b = bn(c3, C3p)
    bnsc_g, bnsc_b = bn(c3, C3p)

    return {
        "w1": mat1x1(w1_t, in_channel, in_channel, c1, C1p).astype(jnp.bfloat16),
        "w2": w2.astype(jnp.bfloat16),
        "w3": mat1x1(w3_t, c2, C2p, c3, C3p).astype(jnp.bfloat16),
        "wsc": mat1x1(wsc_t, in_channel, in_channel, c3, C3p).astype(jnp.bfloat16),
        "w_se1": mat1x1(wse1_t, c3, C3p, cr, CRp).astype(jnp.bfloat16),
        "w_se2": mat1x1(wse2_t, cr, CRp, c3, C3p).astype(jnp.bfloat16),
        "bn1_g": bn1_g, "bn1_b": bn1_b,
        "bn2_g": bn2_g, "bn2_b": bn2_b,
        "bn3_g": bn3_g, "bn3_b": bn3_b,
        "bnsc_g": bnsc_g, "bnsc_b": bnsc_b,
    }


# --------------------------------- main ---------------------------------------

if __name__ == "__main__":
    in_channel = 64
    channels = (64, 64, 128)
    stride = 2
    r = 16

    params = init_bottleneck_params(in_channel, channels, r, seed=0)
    x = jax.random.normal(jax.random.PRNGKey(0), (2, in_channel, 16, 16),
                          jnp.float32)

    fwd = jax.jit(functools.partial(bottleneck_forward, stride=stride,
                                    first=True, out_channels=channels[2]))
    out = jax.block_until_ready(fwd(x, params))

    assert out.shape == (2, channels[2], 8, 8), out.shape
    assert bool(jnp.all(jnp.isfinite(out)))
    assert bool(jnp.all(out >= 0.0))          # final ReLU
    print("KERNEL_OK")
</pallas_src>

<mosaic_0001>
module attributes {stable_mosaic.version = 11 : i64} {
  func.func @_conv1x1_bn_kernel(%arg0: i32, %arg1: memref<128x64xbf16, #tpu.memory_space<vmem>>, %arg2: memref<64x128xbf16, #tpu.memory_space<vmem>>, %arg3: memref<128x128xbf16, #tpu.memory_space<vmem>>, %arg4: memref<1x1x128xf32, #tpu.memory_space<vmem>>, %arg5: memref<1x1x128xf32, #tpu.memory_space<vmem>>) attributes {dimension_semantics = [#tpu.dimension_semantics<parallel>], iteration_bounds = array<i64: 1>, scalar_prefetch = 0 : i64, scratch_operands = 0 : i64, tpu.core_type = #tpu.core_type<tc>, window_params = [{transform_indices = @transform_0, window_bounds = array<i64: 128, 64>}, {pipeline_mode = #tpu.pipeline_mode<synchronous>, transform_indices = @transform_1, window_bounds = array<i64: 64, 128>}, {transform_indices = @transform_2, window_bounds = array<i64: 128, 128>}, {transform_indices = @transform_3, window_bounds = array<i64: 1, 1, 128>}, {transform_indices = @transform_4, window_bounds = array<i64: 1, 1, 128>}]} {
    %c0 = arith.constant 0 : index
    %c0_0 = arith.constant 0 : index
    %0 = vector.load %arg1[%c0, %c0_0] : memref<128x64xbf16, #tpu.memory_space<vmem>>, vector<128x64xbf16>
    %c0_1 = arith.constant 0 : index
    %c0_2 = arith.constant 0 : index
    %1 = vector.load %arg2[%c0_1, %c0_2] : memref<64x128xbf16, #tpu.memory_space<vmem>>, vector<64x128xbf16>
    %cst = arith.constant dense<0.000000e+00> : vector<128x128xf32>
    %2 = tpu.matmul %0, %1, %cst {dimension_numbers = #tpu.dot_dimension_numbers<[1], [0], [0], [1], [0, 0, 1, 1], [], []>} : vector<128x64xbf16>, vector<64x128xbf16>, vector<128x128xf32> -> vector<128x128xf32>
    %3 = arith.truncf %2 : vector<128x128xf32> to vector<128x128xbf16>
    %c0_3 = arith.constant 0 : index
    %c0_4 = arith.constant 0 : index
    %4 = vector.load %arg3[%c0_3, %c0_4] : memref<128x128xbf16, #tpu.memory_space<vmem>>, vector<128x128xbf16>
    tpu.vector_store %arg3[%c0_3, %c0_4], %3 {strides = array<i32>} : memref<128x128xbf16, #tpu.memory_space<vmem>>, vector<128x128xbf16>,
    %cst_5 = arith.constant dense<0.000000e+00> : vector<128xf32>
    %5 = vector.multi_reduction <add>, %2, %cst_5 [0] : vector<128x128xf32> to vector<128xf32>
    %6 = vector.shape_cast %5 : vector<128xf32> to vector<1x128xf32>
    %7 = vector.shape_cast %6 : vector<1x128xf32> to vector<1x1x128xf32>
    %c0_6 = arith.constant 0 : index
    %c0_7 = arith.constant 0 : index
    %c0_8 = arith.constant 0 : index
    %8 = vector.load %arg4[%c0_6, %c0_7, %c0_8] : memref<1x1x128xf32, #tpu.memory_space<vmem>>, vector<1x1x128xf32>
    tpu.vector_store %arg4[%c0_6, %c0_7, %c0_8], %7 {strides = array<i32>} : memref<1x1x128xf32, #tpu.memory_space<vmem>>, vector<1x1x128xf32>,
    %9 = arith.mulf %2, %2 : vector<128x128xf32>
    %cst_9 = arith.constant dense<0.000000e+00> : vector<128xf32>
    %10 = vector.multi_reduction <add>, %9, %cst_9 [0] : vector<128x128xf32> to vector<128xf32>
    %11 = vector.shape_cast %10 : vector<128xf32> to vector<1x128xf32>
    %12 = vector.shape_cast %11 : vector<1x128xf32> to vector<1x1x128xf32>
    %c0_10 = arith.constant 0 : index
    %c0_11 = arith.constant 0 : index
    %c0_12 = arith.constant 0 : index
    %13 = vector.load %arg5[%c0_10, %c0_11, %c0_12] : memref<1x1x128xf32, #tpu.memory_space<vmem>>, vector<1x1x128xf32>
    tpu.vector_store %arg5[%c0_10, %c0_11, %c0_12], %12 {strides = array<i32>} : memref<1x1x128xf32, #tpu.memory_space<vmem>>, vector<1x1x128xf32>,
    return
  }
  func.func @transform_0(%arg0: i32) -> (i32, i32) {
    %c0_i32 = arith.constant 0 : i32
    %c0_i32_0 = arith.constant 0 : i32
    return %arg0, %c0_i32 : i32, i32
  }
  func.func @transform_1(%arg0: i32) -> (i32, i32) {
    %c0_i32 = arith.constant 0 : i32
    %c0_i32_0 = arith.constant 0 : i32
    %c0_i32_1 = arith.constant 0 : i32
    return %c0_i32, %c0_i32_0 : i32, i32
  }
  func.func @transform_2(%arg0: i32) -> (i32, i32) {
    %c0_i32 = arith.constant 0 : i32
    %c0_i32_0 = arith.constant 0 : i32
    return %arg0, %c0_i32 : i32, i32
  }
  func.func @transform_3(%arg0: i32) -> (i32, i32, i32) {
    %c0_i32 = arith.constant 0 : i32
    %c0_i32_0 = arith.constant 0 : i32
    %c0_i32_1 = arith.constant 0 : i32
    return %arg0, %c0_i32, %c0_i32_0 : i32, i32, i32
  }
  func.func @transform_4(%arg0: i32) -> (i32, i32, i32) {
    %c0_i32 = arith.constant 0 : i32
    %c0_i32_0 = arith.constant 0 : i32
    %c0_i32_1 = arith.constant 0 : i32
    return %arg0, %c0_i32, %c0_i32_0 : i32, i32, i32
  }
}

module attributes {stable_mosaic.version = 11 : i64} {
  func.func @_conv1x1_bn_kernel(%arg0: i32, %arg1: memref<128x128xbf16, #tpu.memory_space<vmem>>, %arg2: memref<1x128xf32, #tpu.memory_space<vmem>>, %arg3: memref<1x128xf32, #tpu.memory_space<vmem>>, %arg4: memref<128x128xbf16, #tpu.memory_space<vmem>>, %arg5: memref<128x128xbf16, #tpu.memory_space<vmem>>, %arg6: memref<1x1x128xf32, #tpu.memory_space<vmem>>, %arg7: memref<1x1x128xf32, #tpu.memory_space<vmem>>) attributes {dimension_semantics = [#tpu.dimension_semantics<parallel>], iteration_bounds = array<i64: 1>, scalar_prefetch = 0 : i64, scratch_operands = 0 : i64, tpu.core_type = #tpu.core_type<tc>, window_params = [{transform_indices = @transform_0, window_bounds = array<i64: 128, 128>}, {pipeline_mode = #tpu.pipeline_mode<synchronous>, transform_indices = @transform_1, window_bounds = array<i64: 1, 128>}, {pipeline_mode = #tpu.pipeline_mode<synchronous>, transform_indices = @transform_2, window_bounds = array<i64: 1, 128>}, {pipeline_mode = #tpu.pipeline_mode<synchronous>, transform_indices = @transform_3, window_bounds = array<i64: 128, 128>}, {transform_indices = @transform_4, window_bounds = array<i64: 128, 128>}, {transform_indices = @transform_5, window_bounds = array<i64: 1, 1, 128>}, {transform_indices = @transform_6, window_bounds = array<i64: 1, 1, 128>}]} {
    %c0 = arith.constant 0 : index
    %c0_0 = arith.constant 0 : index
    %0 = vector.load %arg1[%c0, %c0_0] : memref<128x128xbf16, #tpu.memory_space<vmem>>, vector<128x128xbf16>
    %1 = arith.extf %0 : vector<128x128xbf16> to vector<128x128xf32>
    %c0_1 = arith.constant 0 : index
    %c0_2 = arith.constant 0 : index
    %2 = vector.load %arg2[%c0_1, %c0_2] : memref<1x128xf32, #tpu.memory_space<vmem>>, vector<1x128xf32>
    %3 = vector.broadcast %2 : vector<1x128xf32> to vector<128x128xf32>
    %4 = arith.mulf %1, %3 : vector<128x128xf32>
    %c0_3 = arith.constant 0 : index
    %c0_4 = arith.constant 0 : index
    %5 = vector.load %arg3[%c0_3, %c0_4] : memref<1x128xf32, #tpu.memory_space<vmem>>, vector<1x128xf32>
    %6 = vector.broadcast %5 : vector<1x128xf32> to vector<128x128xf32>
    %7 = arith.addf %4, %6 : vector<128x128xf32>
    %cst = arith.constant 0.000000e+00 : f32
    %8 = vector.broadcast %cst : f32 to vector<128x128xf32>
    %9 = arith.maximumf %7, %8 : vector<128x128xf32>
    %10 = arith.truncf %9 : vector<128x128xf32> to vector<128x128xbf16>
    %c0_5 = arith.constant 0 : index
    %c0_6 = arith.constant 0 : index
    %11 = vector.load %arg4[%c0_5, %c0_6] : memref<128x128xbf16, #tpu.memory_space<vmem>>, vector<128x128xbf16>
    %cst_7 = arith.constant dense<0.000000e+00> : vector<128x128xf32>
    %12 = tpu.matmul %10, %11, %cst_7 {dimension_numbers = #tpu.dot_dimension_numbers<[1], [0], [0], [1], [0, 0, 1, 1], [], []>} : vector<128x128xbf16>, vector<128x128xbf16>, vector<128x128xf32> -> vector<128x128xf32>
    %13 = arith.truncf %12 : vector<128x128xf32> to vector<128x128xbf16>
    %c0_8 = arith.constant 0 : index
    %c0_9 = arith.constant 0 : index
    %14 = vector.load %arg5[%c0_8, %c0_9] : memref<128x128xbf16, #tpu.memory_space<vmem>>, vector<128x128xbf16>
    tpu.vector_store %arg5[%c0_8, %c0_9], %13 {strides = array<i32>} : memref<128x128xbf16, #tpu.memory_space<vmem>>, vector<128x128xbf16>,
    %cst_10 = arith.constant dense<0.000000e+00> : vector<128xf32>
    %15 = vector.multi_reduction <add>, %12, %cst_10 [0] : vector<128x128xf32> to vector<128xf32>
    %16 = vector.shape_cast %15 : vector<128xf32> to vector<1x128xf32>
    %17 = vector.shape_cast %16 : vector<1x128xf32> to vector<1x1x128xf32>
    %c0_11 = arith.constant 0 : index
    %c0_12 = arith.constant 0 : index
    %c0_13 = arith.constant 0 : index
    %18 = vector.load %arg6[%c0_11, %c0_12, %c0_13] : memref<1x1x128xf32, #tpu.memory_space<vmem>>, vector<1x1x128xf32>
    tpu.vector_store %arg6[%c0_11, %c0_12, %c0_13], %17 {strides = array<i32>} : memref<1x1x128xf32, #tpu.memory_space<vmem>>, vector<1x1x128xf32>,
    %19 = arith.mulf %12, %12 : vector<128x128xf32>
    %cst_14 = arith.constant dense<0.000000e+00> : vector<128xf32>
    %20 = vector.multi_reduction <add>, %19, %cst_14 [0] : vector<128x128xf32> to vector<128xf32>
    %21 = vector.shape_cast %20 : vector<128xf32> to vector<1x128xf32>
    %22 = vector.shape_cast %21 : vector<1x128xf32> to vector<1x1x128xf32>
    %c0_15 = arith.constant 0 : index
    %c0_16 = arith.constant 0 : index
    %c0_17 = arith.constant 0 : index
    %23 = vector.load %arg7[%c0_15, %c0_16, %c0_17] : memref<1x1x128xf32, #tpu.memory_space<vmem>>, vector<1x1x128xf32>
    tpu.vector_store %arg7[%c0_15, %c0_16, %c0_17], %22 {strides = array<i32>} : memref<1x1x128xf32, #tpu.memory_space<vmem>>, vector<1x1x128xf32>,
    return
  }
  func.func @transform_0(%arg0: i32) -> (i32, i32) {
    %c0_i32 = arith.constant 0 : i32
    %c0_i32_0 = arith.constant 0 : i32
    return %arg0, %c0_i32 : i32, i32
  }
  func.func @transform_1(%arg0: i32) -> (i32, i32) {
    %c0_i32 = arith.constant 0 : i32
    %c0_i32_0 = arith.constant 0 : i32
    %c0_i32_1 = arith.constant 0 : i32
    return %c0_i32, %c0_i32_0 : i32, i32
  }
  func.func @transform_2(%arg0: i32) -> (i32, i32) {
    %c0_i32 = arith.constant 0 : i32
    %c0_i32_0 = arith.constant 0 : i32
    %c0_i32_1 = arith.constant 0 : i32
    return %c0_i32, %c0_i32_0 : i32, i32
  }
  func.func @transform_3(%arg0: i32) -> (i32, i32) {
    %c0_i32 = arith.constant 0 : i32
    %c0_i32_0 = arith.constant 0 : i32
    %c0_i32_1 = arith.constant 0 : i32
    return %c0_i32, %c0_i32_0 : i32, i32
  }
  func.func @transform_4(%arg0: i32) -> (i32, i32) {
    %c0_i32 = arith.constant 0 : i32
    %c0_i32_0 = arith.constant 0 : i32
    return %arg0, %c0_i32 : i32, i32
  }
  func.func @transform_5(%arg0: i32) -> (i32, i32, i32) {
    %c0_i32 = arith.constant 0 : i32
    %c0_i32_0 = arith.constant 0 : i32
    %c0_i32_1 = arith.constant 0 : i32
    return %arg0, %c0_i32, %c0_i32_0 : i32, i32, i32
  }
  func.func @transform_6(%arg0: i32) -> (i32, i32, i32) {
    %c0_i32 = arith.constant 0 : i32
    %c0_i32_0 = arith.constant 0 : i32
    %c0_i32_1 = arith.constant 0 : i32
    return %arg0, %c0_i32, %c0_i32_0 : i32, i32, i32
  }
}

module attributes {stable_mosaic.version = 11 : i64} {
  func.func @_conv3x3_bn_kernel(%arg0: i32, %arg1: memref<1x8x8x128xbf16, #tpu.memory_space<vmem>>, %arg2: memref<1x1x128xf32, #tpu.memory_space<vmem>>, %arg3: memref<1x1x128xf32, #tpu.memory_space<vmem>>, %arg4: memref<3x384x128xbf16, #tpu.memory_space<vmem>>, %arg5: memref<1x64x128xbf16, #tpu.memory_space<vmem>>, %arg6: memref<1x1x128xf32, #tpu.memory_space<vmem>>, %arg7: memref<1x1x128xf32, #tpu.memory_space<vmem>>, %arg8: memref<10x10x128xf32, #tpu.memory_space<vmem>>) attributes {dimension_semantics = [#tpu.dimension_semantics<parallel>], iteration_bounds = array<i64: 2>, scalar_prefetch = 0 : i64, scratch_operands = 1 : i64, tpu.core_type = #tpu.core_type<tc>, window_params = [{transform_indices = @transform_0, window_bounds = array<i64: 1, 8, 8, 128>}, {pipeline_mode = #tpu.pipeline_mode<synchronous>, transform_indices = @transform_1, window_bounds = array<i64: 1, 1, 128>}, {pipeline_mode = #tpu.pipeline_mode<synchronous>, transform_indices = @transform_2, window_bounds = array<i64: 1, 1, 128>}, {pipeline_mode = #tpu.pipeline_mode<synchronous>, transform_indices = @transform_3, window_bounds = array<i64: 3, 384, 128>}, {transform_indices = @transform_4, window_bounds = array<i64: 1, 64, 128>}, {transform_indices = @transform_5, window_bounds = array<i64: 1, 1, 128>}, {transform_indices = @transform_6, window_bounds = array<i64: 1, 1, 128>}]} {
    %c0 = arith.constant 0 : index
    %c0_0 = arith.constant 0 : index
    %c0_1 = arith.constant 0 : index
    %c0_2 = arith.constant 0 : index
    %0 = vector.load %arg1[%c0, %c0_0, %c0_1, %c0_2] : memref<1x8x8x128xbf16, #tpu.memory_space<vmem>>, vector<1x8x8x128xbf16>
    %1 = vector.shape_cast %0 : vector<1x8x8x128xbf16> to vector<8x8x128xbf16>
    %2 = arith.extf %1 : vector<8x8x128xbf16> to vector<8x8x128xf32>
    %c0_3 = arith.constant 0 : index
    %c0_4 = arith.constant 0 : index
    %c0_5 = arith.constant 0 : index
    %3 = vector.load %arg2[%c0_3, %c0_4, %c0_5] : memref<1x1x128xf32, #tpu.memory_space<vmem>>, vector<1x1x128xf32>
    %4 = vector.broadcast %3 : vector<1x1x128xf32> to vector<8x8x128xf32>
    %5 = arith.mulf %2, %4 : vector<8x8x128xf32>
    %c0_6 = arith.constant 0 : index
    %c0_7 = arith.constant 0 : index
    %c0_8 = arith.constant 0 : index
    %6 = vector.load %arg3[%c0_6, %c0_7, %c0_8] : memref<1x1x128xf32, #tpu.memory_space<vmem>>, vector<1x1x128xf32>
    %7 = vector.broadcast %6 : vector<1x1x128xf32> to vector<8x8x128xf32>
    %8 = arith.addf %5, %7 : vector<8x8x128xf32>
    %cst = arith.constant 0.000000e+00 : f32
    %9 = vector.broadcast %cst : f32 to vector<8x8x128xf32>
    %10 = arith.maximumf %8, %9 : vector<8x8x128xf32>
    %cst_9 = arith.constant 0.000000e+00 : f32
    %11 = vector.broadcast %cst_9 : f32 to vector<10x10x128xf32>
    %c0_10 = arith.constant 0 : index
    %c0_11 = arith.constant 0 : index
    %c0_12 = arith.constant 0 : index
    %12 = vector.load %arg8[%c0_10, %c0_11, %c0_12] : memref<10x10x128xf32, #tpu.memory_space<vmem>>, vector<10x10x128xf32>
    tpu.vector_store %arg8[%c0_10, %c0_11, %c0_12], %11 {strides = array<i32>} : memref<10x10x128xf32, #tpu.memory_space<vmem>>, vector<10x10x128xf32>,
    %c1 = arith.constant 1 : index
    %c0_13 = arith.constant 0 : index
    %c0_14 = arith.constant 0 : index
    %13 = vector.load %arg8[%c1, %c0_13, %c0_14] : memref<10x10x128xf32, #tpu.memory_space<vmem>>, vector<8x8x128xf32>
    tpu.vector_store %arg8[%c1, %c0_13, %c0_14], %10 {strides = array<i32>} : memref<10x10x128xf32, #tpu.memory_space<vmem>>, vector<8x8x128xf32>,
    %c0_15 = arith.constant 0 : index
    %c0_16 = arith.constant 0 : index
    %c0_17 = arith.constant 0 : index
    %14 = vector.load %arg8[%c0_15, %c0_16, %c0_17] : memref<10x10x128xf32, #tpu.memory_space<vmem>>, vector<10x10x128xf32>
    %15 = vector.extract_strided_slice %14 {offsets = [0, 9, 0], sizes = [10, 1, 128], strides = [1, 1, 1]} : vector<10x10x128xf32> to vector<10x1x128xf32>
    %16 = vector.extract_strided_slice %14 {offsets = [0, 0, 0], sizes = [10, 9, 128], strides = [1, 1, 1]} : vector<10x10x128xf32> to vector<10x9x128xf32>
    %17 = tpu.concatenate %15, %16 in 1 : vector<10x1x128xf32>, vector<10x9x128xf32> -> vector<10x10x128xf32>
    %18 = vector.extract_strided_slice %14 {offsets = [0, 1, 0], sizes = [10, 9, 128], strides = [1, 1, 1]} : vector<10x10x128xf32> to vector<10x9x128xf32>
    %19 = vector.extract_strided_slice %14 {offsets = [0, 0, 0], sizes = [10, 1, 128], strides = [1, 1, 1]} : vector<10x10x128xf32> to vector<10x1x128xf32>
    %20 = tpu.concatenate %18, %19 in 1 : vector<10x9x128xf32>, vector<10x1x128xf32> -> vector<10x10x128xf32>
    %cst_18 = arith.constant 0.000000e+00 : f32
    %21 = vector.broadcast %cst_18 : f32 to vector<64x128xf32>
    %22 = vector.extract_strided_slice %17 {offsets = [0, 0, 0], sizes = [8, 8, 128], strides = [1, 1, 1]} : vector<10x10x128xf32> to vector<8x8x128xf32>
    %23 = vector.extract_strided_slice %14 {offsets = [0, 0, 0], sizes = [8, 8, 128], strides = [1, 1, 1]} : vector<10x10x128xf32> to vector<8x8x128xf32>
    %24 = vector.extract_strided_slice %20 {offsets = [0, 0, 0], sizes = [8, 8, 128], strides = [1, 1, 1]} : vector<10x10x128xf32> to vector<8x8x128xf32>
    %25 = tpu.concatenate %22, %23, %24 in 2 : vector<8x8x128xf32>, vector<8x8x128xf32>, vector<8x8x128xf32> -> vector<8x8x384xf32>
    %26 = vector.shape_cast %25 : vector<8x8x384xf32> to vector<64x384xf32>
    %27 = arith.truncf %26 : vector<64x384xf32> to vector<64x384xbf16>
    %c0_19 = arith.constant 0 : index
    %c0_20 = arith.constant 0 : index
    %c0_21 = arith.constant 0 : index
    %28 = vector.load %arg4[%c0_19, %c0_20, %c0_21] : memref<3x384x128xbf16, #tpu.memory_space<vmem>>, vector<1x384x128xbf16>
    %29 = vector.shape_cast %28 : vector<1x384x128xbf16> to vector<384x128xbf16>
    %cst_22 = arith.constant dense<0.000000e+00> : vector<64x128xf32>
    %30 = tpu.matmul %27, %29, %cst_22 {dimension_numbers = #tpu.dot_dimension_numbers<[1], [0], [0], [1], [0, 0, 1, 1], [], []>} : vector<64x384xbf16>, vector<384x128xbf16>, vector<64x128xf32> -> vector<64x128xf32>
    %31 = arith.addf %21, %30 : vector<64x128xf32>
    %32 = vector.extract_strided_slice %17 {offsets = [1, 0, 0], sizes = [8, 8, 128], strides = [1, 1, 1]} : vector<10x10x128xf32> to vector<8x8x128xf32>
    %33 = vector.extract_strided_slice %14 {offsets = [1, 0, 0], sizes = [8, 8, 128], strides = [1, 1, 1]} : vector<10x10x128xf32> to vector<8x8x128xf32>
    %34 = vector.extract_strided_slice %20 {offsets = [1, 0, 0], sizes = [8, 8, 128], strides = [1, 1, 1]} : vector<10x10x128xf32> to vector<8x8x128xf32>
    %35 = tpu.concatenate %32, %33, %34 in 2 : vector<8x8x128xf32>, vector<8x8x128xf32>, vector<8x8x128xf32> -> vector<8x8x384xf32>
    %36 = vector.shape_cast %35 : vector<8x8x384xf32> to vector<64x384xf32>
    %37 = arith.truncf %36 : vector<64x384xf32> to vector<64x384xbf16>
    %c1_23 = arith.constant 1 : index
    %c0_24 = arith.constant 0 : index
    %c0_25 = arith.constant 0 : index
    %38 = vector.load %arg4[%c1_23, %c0_24, %c0_25] : memref<3x384x128xbf16, #tpu.memory_space<vmem>>, vector<1x384x128xbf16>
    %39 = vector.shape_cast %38 : vector<1x384x128xbf16> to vector<384x128xbf16>
    %cst_26 = arith.constant dense<0.000000e+00> : vector<64x128xf32>
    %40 = tpu.matmul %37, %39, %cst_26 {dimension_numbers = #tpu.dot_dimension_numbers<[1], [0], [0], [1], [0, 0, 1, 1], [], []>} : vector<64x384xbf16>, vector<384x128xbf16>, vector<64x128xf32> -> vector<64x128xf32>
    %41 = arith.addf %31, %40 : vector<64x128xf32>
    %42 = vector.extract_strided_slice %17 {offsets = [2, 0, 0], sizes = [8, 8, 128], strides = [1, 1, 1]} : vector<10x10x128xf32> to vector<8x8x128xf32>
    %43 = vector.extract_strided_slice %14 {offsets = [2, 0, 0], sizes = [8, 8, 128], strides = [1, 1, 1]} : vector<10x10x128xf32> to vector<8x8x128xf32>
    %44 = vector.extract_strided_slice %20 {offsets = [2, 0, 0], sizes = [8, 8, 128], strides = [1, 1, 1]} : vector<10x10x128xf32> to vector<8x8x128xf32>
    %45 = tpu.concatenate %42, %43, %44 in 2 : vector<8x8x128xf32>, vector<8x8x128xf32>, vector<8x8x128xf32> -> vector<8x8x384xf32>
    %46 = vector.shape_cast %45 : vector<8x8x384xf32> to vector<64x384xf32>
    %47 = arith.truncf %46 : vector<64x384xf32> to vector<64x384xbf16>
    %c2 = arith.constant 2 : index
    %c0_27 = arith.constant 0 : index
    %c0_28 = arith.constant 0 : index
    %48 = vector.load %arg4[%c2, %c0_27, %c0_28] : memref<3x384x128xbf16, #tpu.memory_space<vmem>>, vector<1x384x128xbf16>
    %49 = vector.shape_cast %48 : vector<1x384x128xbf16> to vector<384x128xbf16>
    %cst_29 = arith.constant dense<0.000000e+00> : vector<64x128xf32>
    %50 = tpu.matmul %47, %49, %cst_29 {dimension_numbers = #tpu.dot_dimension_numbers<[1], [0], [0], [1], [0, 0, 1, 1], [], []>} : vector<64x384xbf16>, vector<384x128xbf16>, vector<64x128xf32> -> vector<64x128xf32>
    %51 = arith.addf %41, %50 : vector<64x128xf32>
    %52 = vector.shape_cast %51 : vector<64x128xf32> to vector<1x64x128xf32>
    %53 = arith.truncf %52 : vector<1x64x128xf32> to vector<1x64x128xbf16>
    %c0_30 = arith.constant 0 : index
    %c0_31 = arith.constant 0 : index
    %c0_32 = arith.constant 0 : index
    %54 = vector.load %arg5[%c0_30, %c0_31, %c0_32] : memref<1x64x128xbf16, #tpu.memory_space<vmem>>, vector<1x64x128xbf16>
    tpu.vector_store %arg5[%c0_30, %c0_31, %c0_32], %53 {strides = array<i32>} : memref<1x64x128xbf16, #tpu.memory_space<vmem>>, vector<1x64x128xbf16>,
    %cst_33 = arith.constant dense<0.000000e+00> : vector<128xf32>
    %55 = vector.multi_reduction <add>, %51, %cst_33 [0] : vector<64x128xf32> to vector<128xf32>
    %56 = vector.shape_cast %55 : vector<128xf32> to vector<1x128xf32>
    %57 = vector.shape_cast %56 : vector<1x128xf32> to vector<1x1x128xf32>
    %c0_34 = arith.constant 0 : index
    %c0_35 = arith.constant 0 : index
    %c0_36 = arith.constant 0 : index
    %58 = vector.load %arg6[%c0_34, %c0_35, %c0_36] : memref<1x1x128xf32, #tpu.memory_space<vmem>>, vector<1x1x128xf32>
    tpu.vector_store %arg6[%c0_34, %c0_35, %c0_36], %57 {strides = array<i32>} : memref<1x1x128xf32, #tpu.memory_space<vmem>>, vector<1x1x128xf32>,
    %59 = arith.mulf %51, %51 : vector<64x128xf32>
    %cst_37 = arith.constant dense<0.000000e+00> : vector<128xf32>
    %60 = vector.multi_reduction <add>, %59, %cst_37 [0] : vector<64x128xf32> to vector<128xf32>
    %61 = vector.shape_cast %60 : vector<128xf32> to vector<1x128xf32>
    %62 = vector.shape_cast %61 : vector<1x128xf32> to vector<1x1x128xf32>
    %c0_38 = arith.constant 0 : index
    %c0_39 = arith.constant 0 : index
    %c0_40 = arith.constant 0 : index
    %63 = vector.load %arg7[%c0_38, %c0_39, %c0_40] : memref<1x1x128xf32, #tpu.memory_space<vmem>>, vector<1x1x128xf32>
    tpu.vector_store %arg7[%c0_38, %c0_39, %c0_40], %62 {strides = array<i32>} : memref<1x1x128xf32, #tpu.memory_space<vmem>>, vector<1x1x128xf32>,
    return
  }
  func.func @transform_0(%arg0: i32) -> (i32, i32, i32, i32) {
    %c0_i32 = arith.constant 0 : i32
    %c0_i32_0 = arith.constant 0 : i32
    %c0_i32_1 = arith.constant 0 : i32
    %c0_i32_2 = arith.constant 0 : i32
    return %arg0, %c0_i32, %c0_i32_0, %c0_i32_1 : i32, i32, i32, i32
  }
  func.func @transform_1(%arg0: i32) -> (i32, i32, i32) {
    %c0_i32 = arith.constant 0 : i32
    %c0_i32_0 = arith.constant 0 : i32
    %c0_i32_1 = arith.constant 0 : i32
    %c0_i32_2 = arith.constant 0 : i32
    return %c0_i32, %c0_i32_0, %c0_i32_1 : i32, i32, i32
  }
  func.func @transform_2(%arg0: i32) -> (i32, i32, i32) {
    %c0_i32 = arith.constant 0 : i32
    %c0_i32_0 = arith.constant 0 : i32
    %c0_i32_1 = arith.constant 0 : i32
    %c0_i32_2 = arith.constant 0 : i32
    return %c0_i32, %c0_i32_0, %c0_i32_1 : i32, i32, i32
  }
  func.func @transform_3(%arg0: i32) -> (i32, i32, i32) {
    %c0_i32 = arith.constant 0 : i32
    %c0_i32_0 = arith.constant 0 : i32
    %c0_i32_1 = arith.constant 0 : i32
    %c0_i32_2 = arith.constant 0 : i32
    return %c0_i32, %c0_i32_0, %c0_i32_1 : i32, i32, i32
  }
  func.func @transform_4(%arg0: i32) -> (i32, i32, i32) {
    %c0_i32 = arith.constant 0 : i32
    %c0_i32_0 = arith.constant 0 : i32
    %c0_i32_1 = arith.constant 0 : i32
    return %arg0, %c0_i32, %c0_i32_0 : i32, i32, i32
  }
  func.func @transform_5(%arg0: i32) -> (i32, i32, i32) {
    %c0_i32 = arith.constant 0 : i32
    %c0_i32_0 = arith.constant 0 : i32
    %c0_i32_1 = arith.constant 0 : i32
    return %arg0, %c0_i32, %c0_i32_0 : i32, i32, i32
  }
  func.func @transform_6(%arg0: i32) -> (i32, i32, i32) {
    %c0_i32 = arith.constant 0 : i32
    %c0_i32_0 = arith.constant 0 : i32
    %c0_i32_1 = arith.constant 0 : i32
    return %arg0, %c0_i32, %c0_i32_0 : i32, i32, i32
  }
}

module attributes {stable_mosaic.version = 11 : i64} {
  func.func @_gap_bn_kernel(%arg0: i32, %arg1: memref<1x64x128xbf16, #tpu.memory_space<vmem>>, %arg2: memref<1x1x128xf32, #tpu.memory_space<vmem>>, %arg3: memref<1x1x128xf32, #tpu.memory_space<vmem>>, %arg4: memref<1x1x128xf32, #tpu.memory_space<vmem>>) attributes {dimension_semantics = [#tpu.dimension_semantics<parallel>], iteration_bounds = array<i64: 2>, scalar_prefetch = 0 : i64, scratch_operands = 0 : i64, tpu.core_type = #tpu.core_type<tc>, window_params = [{transform_indices = @transform_0, window_bounds = array<i64: 1, 64, 128>}, {pipeline_mode = #tpu.pipeline_mode<synchronous>, transform_indices = @transform_1, window_bounds = array<i64: 1, 1, 128>}, {pipeline_mode = #tpu.pipeline_mode<synchronous>, transform_indices = @transform_2, window_bounds = array<i64: 1, 1, 128>}, {transform_indices = @transform_3, window_bounds = array<i64: 1, 1, 128>}]} {
    %c0 = arith.constant 0 : index
    %c0_0 = arith.constant 0 : index
    %c0_1 = arith.constant 0 : index
    %0 = vector.load %arg1[%c0, %c0_0, %c0_1] : memref<1x64x128xbf16, #tpu.memory_space<vmem>>, vector<1x64x128xbf16>
    %1 = arith.extf %0 : vector<1x64x128xbf16> to vector<1x64x128xf32>
    %c0_2 = arith.constant 0 : index
    %c0_3 = arith.constant 0 : index
    %c0_4 = arith.constant 0 : index
    %2 = vector.load %arg2[%c0_2, %c0_3, %c0_4] : memref<1x1x128xf32, #tpu.memory_space<vmem>>, vector<1x1x128xf32>
    %3 = vector.broadcast %2 : vector<1x1x128xf32> to vector<1x64x128xf32>
    %4 = arith.mulf %1, %3 : vector<1x64x128xf32>
    %c0_5 = arith.constant 0 : index
    %c0_6 = arith.constant 0 : index
    %c0_7 = arith.constant 0 : index
    %5 = vector.load %arg3[%c0_5, %c0_6, %c0_7] : memref<1x1x128xf32, #tpu.memory_space<vmem>>, vector<1x1x128xf32>
    %6 = vector.broadcast %5 : vector<1x1x128xf32> to vector<1x64x128xf32>
    %7 = arith.addf %4, %6 : vector<1x64x128xf32>
    %cst = arith.constant 0.000000e+00 : f32
    %8 = vector.broadcast %cst : f32 to vector<1x64x128xf32>
    %9 = arith.maximumf %7, %8 : vector<1x64x128xf32>
    %cst_8 = arith.constant dense<0.000000e+00> : vector<1x128xf32>
    %10 = vector.multi_reduction <add>, %9, %cst_8 [1] : vector<1x64x128xf32> to vector<1x128xf32>
    %11 = vector.shape_cast %10 : vector<1x128xf32> to vector<1x1x128xf32>
    %cst_9 = arith.constant 6.400000e+01 : f32
    %12 = vector.broadcast %cst_9 : f32 to vector<1x1x128xf32>
    %13 = arith.divf %11, %12 : vector<1x1x128xf32>
    %c0_10 = arith.constant 0 : index
    %c0_11 = arith.constant 0 : index
    %c0_12 = arith.constant 0 : index
    %14 = vector.load %arg4[%c0_10, %c0_11, %c0_12] : memref<1x1x128xf32, #tpu.memory_space<vmem>>, vector<1x1x128xf32>
    tpu.vector_store %arg4[%c0_10, %c0_11, %c0_12], %13 {strides = array<i32>} : memref<1x1x128xf32, #tpu.memory_space<vmem>>, vector<1x1x128xf32>,
    return
  }
  func.func @transform_0(%arg0: i32) -> (i32, i32, i32) {
    %c0_i32 = arith.constant 0 : i32
    %c0_i32_0 = arith.constant 0 : i32
    %c0_i32_1 = arith.constant 0 : i32
    return %arg0, %c0_i32, %c0_i32_0 : i32, i32, i32
  }
  func.func @transform_1(%arg0: i32) -> (i32, i32, i32) {
    %c0_i32 = arith.constant 0 : i32
    %c0_i32_0 = arith.constant 0 : i32
    %c0_i32_1 = arith.constant 0 : i32
    %c0_i32_2 = arith.constant 0 : i32
    return %c0_i32, %c0_i32_0, %c0_i32_1 : i32, i32, i32
  }
  func.func @transform_2(%arg0: i32) -> (i32, i32, i32) {
    %c0_i32 = arith.constant 0 : i32
    %c0_i32_0 = arith.constant 0 : i32
    %c0_i32_1 = arith.constant 0 : i32
    %c0_i32_2 = arith.constant 0 : i32
    return %c0_i32, %c0_i32_0, %c0_i32_1 : i32, i32, i32
  }
  func.func @transform_3(%arg0: i32) -> (i32, i32, i32) {
    %c0_i32 = arith.constant 0 : i32
    %c0_i32_0 = arith.constant 0 : i32
    %c0_i32_1 = arith.constant 0 : i32
    return %arg0, %c0_i32, %c0_i32_0 : i32, i32, i32
  }
}

module attributes {stable_mosaic.version = 11 : i64} {
  func.func @_se_mlp_kernel(%arg0: memref<8x128xf32, #tpu.memory_space<vmem>>, %arg1: memref<128x128xbf16, #tpu.memory_space<vmem>>, %arg2: memref<128x128xbf16, #tpu.memory_space<vmem>>, %arg3: memref<8x128xf32, #tpu.memory_space<vmem>>) attributes {dimension_semantics = [], scalar_prefetch = 0 : i64, scratch_operands = 0 : i64, tpu.core_type = #tpu.core_type<tc>} {
    %c0 = arith.constant 0 : index
    %c0_0 = arith.constant 0 : index
    %0 = vector.load %arg0[%c0, %c0_0] : memref<8x128xf32, #tpu.memory_space<vmem>>, vector<8x128xf32>
    %1 = arith.truncf %0 : vector<8x128xf32> to vector<8x128xbf16>
    %c0_1 = arith.constant 0 : index
    %c0_2 = arith.constant 0 : index
    %2 = vector.load %arg1[%c0_1, %c0_2] : memref<128x128xbf16, #tpu.memory_space<vmem>>, vector<128x128xbf16>
    %cst = arith.constant dense<0.000000e+00> : vector<8x128xf32>
    %3 = tpu.matmul %1, %2, %cst {dimension_numbers = #tpu.dot_dimension_numbers<[1], [0], [0], [1], [0, 0, 1, 1], [], []>} : vector<8x128xbf16>, vector<128x128xbf16>, vector<8x128xf32> -> vector<8x128xf32>
    %cst_3 = arith.constant 0.000000e+00 : f32
    %4 = vector.broadcast %cst_3 : f32 to vector<8x128xf32>
    %5 = arith.maximumf %3, %4 : vector<8x128xf32>
    %6 = arith.truncf %5 : vector<8x128xf32> to vector<8x128xbf16>
    %c0_4 = arith.constant 0 : index
    %c0_5 = arith.constant 0 : index
    %7 = vector.load %arg2[%c0_4, %c0_5] : memref<128x128xbf16, #tpu.memory_space<vmem>>, vector<128x128xbf16>
    %cst_6 = arith.constant dense<0.000000e+00> : vector<8x128xf32>
    %8 = tpu.matmul %6, %7, %cst_6 {dimension_numbers = #tpu.dot_dimension_numbers<[1], [0], [0], [1], [0, 0, 1, 1], [], []>} : vector<8x128xbf16>, vector<128x128xbf16>, vector<8x128xf32> -> vector<8x128xf32>
    %cst_7 = arith.constant 0.000000e+00 : f32
    %9 = vector.broadcast %cst_7 : f32 to vector<8x128xf32>
    %10 = arith.maximumf %8, %9 : vector<8x128xf32>
    %cst_8 = arith.constant 0.000000e+00 : f32
    %11 = vector.broadcast %cst_8 : f32 to vector<8x128xf32>
    %12 = arith.subf %11, %10 : vector<8x128xf32>
    %13 = math.exp %12 : vector<8x128xf32>
    %cst_9 = arith.constant 1.000000e+00 : f32
    %14 = vector.broadcast %cst_9 : f32 to vector<8x128xf32>
    %15 = arith.addf %14, %13 : vector<8x128xf32>
    %cst_10 = arith.constant 1.000000e+00 : f32
    %16 = vector.broadcast %cst_10 : f32 to vector<8x128xf32>
    %17 = arith.divf %16, %15 : vector<8x128xf32>
    %c0_11 = arith.constant 0 : index
    %c0_12 = arith.constant 0 : index
    %18 = vector.load %arg3[%c0_11, %c0_12] : memref<8x128xf32, #tpu.memory_space<vmem>>, vector<8x128xf32>
    tpu.vector_store %arg3[%c0_11, %c0_12], %17 {strides = array<i32>} : memref<8x128xf32, #tpu.memory_space<vmem>>, vector<8x128xf32>,
    return
  }
}

module attributes {stable_mosaic.version = 11 : i64} {
  func.func @_se_residual_kernel(%arg0: i32, %arg1: i32, %arg2: memref<1x64x128xbf16, #tpu.memory_space<vmem>>, %arg3: memref<1x1x128xf32, #tpu.memory_space<vmem>>, %arg4: memref<1x1x128xf32, #tpu.memory_space<vmem>>, %arg5: memref<1x1x128xf32, #tpu.memory_space<vmem>>, %arg6: memref<1x64x128xbf16, #tpu.memory_space<vmem>>, %arg7: memref<1x1x128xf32, #tpu.memory_space<vmem>>, %arg8: memref<1x1x128xf32, #tpu.memory_space<vmem>>, %arg9: memref<1x64x128xf32, #tpu.memory_space<vmem>>) attributes {dimension_semantics = [#tpu.dimension_semantics<parallel>, #tpu.dimension_semantics<parallel>], iteration_bounds = array<i64: 2, 1>, scalar_prefetch = 0 : i64, scratch_operands = 0 : i64, tpu.core_type = #tpu.core_type<tc>, window_params = [{transform_indices = @transform_0, window_bounds = array<i64: 1, 64, 128>}, {pipeline_mode = #tpu.pipeline_mode<synchronous>, transform_indices = @transform_1, window_bounds = array<i64: 1, 1, 128>}, {pipeline_mode = #tpu.pipeline_mode<synchronous>, transform_indices = @transform_2, window_bounds = array<i64: 1, 1, 128>}, {transform_indices = @transform_3, window_bounds = array<i64: 1, 1, 128>}, {transform_indices = @transform_4, window_bounds = array<i64: 1, 64, 128>}, {pipeline_mode = #tpu.pipeline_mode<synchronous>, transform_indices = @transform_5, window_bounds = array<i64: 1, 1, 128>}, {pipeline_mode = #tpu.pipeline_mode<synchronous>, transform_indices = @transform_6, window_bounds = array<i64: 1, 1, 128>}, {transform_indices = @transform_7, window_bounds = array<i64: 1, 64, 128>}]} {
    %c0 = arith.constant 0 : index
    %c0_0 = arith.constant 0 : index
    %c0_1 = arith.constant 0 : index
    %0 = vector.load %arg2[%c0, %c0_0, %c0_1] : memref<1x64x128xbf16, #tpu.memory_space<vmem>>, vector<1x64x128xbf16>
    %1 = arith.extf %0 : vector<1x64x128xbf16> to vector<1x64x128xf32>
    %c0_2 = arith.constant 0 : index
    %c0_3 = arith.constant 0 : index
    %c0_4 = arith.constant 0 : index
    %2 = vector.load %arg3[%c0_2, %c0_3, %c0_4] : memref<1x1x128xf32, #tpu.memory_space<vmem>>, vector<1x1x128xf32>
    %3 = vector.broadcast %2 : vector<1x1x128xf32> to vector<1x64x128xf32>
    %4 = arith.mulf %1, %3 : vector<1x64x128xf32>
    %c0_5 = arith.constant 0 : index
    %c0_6 = arith.constant 0 : index
    %c0_7 = arith.constant 0 : index
    %5 = vector.load %arg4[%c0_5, %c0_6, %c0_7] : memref<1x1x128xf32, #tpu.memory_space<vmem>>, vector<1x1x128xf32>
    %6 = vector.broadcast %5 : vector<1x1x128xf32> to vector<1x64x128xf32>
    %7 = arith.addf %4, %6 : vector<1x64x128xf32>
    %cst = arith.constant 0.000000e+00 : f32
    %8 = vector.broadcast %cst : f32 to vector<1x64x128xf32>
    %9 = arith.maximumf %7, %8 : vector<1x64x128xf32>
    %c0_8 = arith.constant 0 : index
    %c0_9 = arith.constant 0 : index
    %c0_10 = arith.constant 0 : index
    %10 = vector.load %arg6[%c0_8, %c0_9, %c0_10] : memref<1x64x128xbf16, #tpu.memory_space<vmem>>, vector<1x64x128xbf16>
    %11 = arith.extf %10 : vector<1x64x128xbf16> to vector<1x64x128xf32>
    %c0_11 = arith.constant 0 : index
    %c0_12 = arith.constant 0 : index
    %c0_13 = arith.constant 0 : index
    %12 = vector.load %arg7[%c0_11, %c0_12, %c0_13] : memref<1x1x128xf32, #tpu.memory_space<vmem>>, vector<1x1x128xf32>
    %13 = vector.broadcast %12 : vector<1x1x128xf32> to vector<1x64x128xf32>
    %14 = arith.mulf %11, %13 : vector<1x64x128xf32>
    %c0_14 = arith.constant 0 : index
    %c0_15 = arith.constant 0 : index
    %c0_16 = arith.constant 0 : index
    %15 = vector.load %arg8[%c0_14, %c0_15, %c0_16] : memref<1x1x128xf32, #tpu.memory_space<vmem>>, vector<1x1x128xf32>
    %16 = vector.broadcast %15 : vector<1x1x128xf32> to vector<1x64x128xf32>
    %17 = arith.addf %14, %16 : vector<1x64x128xf32>
    %c0_17 = arith.constant 0 : index
    %c0_18 = arith.constant 0 : index
    %c0_19 = arith.constant 0 : index
    %18 = vector.load %arg5[%c0_17, %c0_18, %c0_19] : memref<1x1x128xf32, #tpu.memory_space<vmem>>, vector<1x1x128xf32>
    %19 = vector.broadcast %18 : vector<1x1x128xf32> to vector<1x64x128xf32>
    %20 = arith.mulf %9, %19 : vector<1x64x128xf32>
    %21 = arith.addf %20, %17 : vector<1x64x128xf32>
    %cst_20 = arith.constant 0.000000e+00 : f32
    %22 = vector.broadcast %cst_20 : f32 to vector<1x64x128xf32>
    %23 = arith.maximumf %21, %22 : vector<1x64x128xf32>
    %c0_21 = arith.constant 0 : index
    %c0_22 = arith.constant 0 : index
    %c0_23 = arith.constant 0 : index
    %24 = vector.load %arg9[%c0_21, %c0_22, %c0_23] : memref<1x64x128xf32, #tpu.memory_space<vmem>>, vector<1x64x128xf32>
    tpu.vector_store %arg9[%c0_21, %c0_22, %c0_23], %23 {strides = array<i32>} : memref<1x64x128xf32, #tpu.memory_space<vmem>>, vector<1x64x128xf32>,
    return
  }
  func.func @transform_0(%arg0: i32, %arg1: i32) -> (i32, i32, i32) {
    %c0_i32 = arith.constant 0 : i32
    %c0_i32_0 = arith.constant 0 : i32
    return %arg0, %arg1, %c0_i32 : i32, i32, i32
  }
  func.func @transform_1(%arg0: i32, %arg1: i32) -> (i32, i32, i32) {
    %c0_i32 = arith.constant 0 : i32
    %c0_i32_0 = arith.constant 0 : i32
    %c0_i32_1 = arith.constant 0 : i32
    %c0_i32_2 = arith.constant 0 : i32
    return %c0_i32, %c0_i32_0, %c0_i32_1 : i32, i32, i32
  }
  func.func @transform_2(%arg0: i32, %arg1: i32) -> (i32, i32, i32) {
    %c0_i32 = arith.constant 0 : i32
    %c0_i32_0 = arith.constant 0 : i32
    %c0_i32_1 = arith.constant 0 : i32
    %c0_i32_2 = arith.constant 0 : i32
    return %c0_i32, %c0_i32_0, %c0_i32_1 : i32, i32, i32
  }
  func.func @transform_3(%arg0: i32, %arg1: i32) -> (i32, i32, i32) {
    %c0_i32 = arith.constant 0 : i32
    %c0_i32_0 = arith.constant 0 : i32
    %c0_i32_1 = arith.constant 0 : i32
    return %arg0, %c0_i32, %c0_i32_0 : i32, i32, i32
  }
  func.func @transform_4(%arg0: i32, %arg1: i32) -> (i32, i32, i32) {
    %c0_i32 = arith.constant 0 : i32
    %c0_i32_0 = arith.constant 0 : i32
    return %arg0, %arg1, %c0_i32 : i32, i32, i32
  }
  func.func @transform_5(%arg0: i32, %arg1: i32) -> (i32, i32, i32) {
    %c0_i32 = arith.constant 0 : i32
    %c0_i32_0 = arith.constant 0 : i32
    %c0_i32_1 = arith.constant 0 : i32
    %c0_i32_2 = arith.constant 0 : i32
    return %c0_i32, %c0_i32_0, %c0_i32_1 : i32, i32, i32
  }
  func.func @transform_6(%arg0: i32, %arg1: i32) -> (i32, i32, i32) {
    %c0_i32 = arith.constant 0 : i32
    %c0_i32_0 = arith.constant 0 : i32
    %c0_i32_1 = arith.constant 0 : i32
    %c0_i32_2 = arith.constant 0 : i32
    return %c0_i32, %c0_i32_0, %c0_i32_1 : i32, i32, i32
  }
  func.func @transform_7(%arg0: i32, %arg1: i32) -> (i32, i32, i32) {
    %c0_i32 = arith.constant 0 : i32
    %c0_i32_0 = arith.constant 0 : i32
    return %arg0, %arg1, %c0_i32 : i32, i32, i32
  }
}

</mosaic_0001>

<bundles_post_ra>
// kernel: bottleneck_forward.11
= control target key start
LH: loop header
LB: loop body
LE: loop exit
PB: predicated region body
PF: predicated region fallthrough
CT: control target
= control target key end

     0   :  { %s351_s12 = smov 0   ;;  %s378_s0 = inlined_call_operand.vmem [shape: bf16[2,64,128], index: 0, kind: input, shape index: {}]   ;;  %s379_s1 = inlined_call_operand.vmem [shape: f32[1,1,128], index: 1, kind: input, shape index: {}]   ;;  %s380_s2 = inlined_call_operand.vmem [shape: f32[1,1,128], index: 2, kind: input, shape index: {}]   ;;  %s381_s3 = inlined_call_operand.vmem [shape: f32[2,1,128], index: 3, kind: output, shape index: {}]  }
   0x1 LB: > { %s284_s13 = sadd.s32 4294967295, %s329_s12   ;;  %p288_p0 = scmp.ge.s32.totalorder %s329_s12, 1  ;;  %s329_s12 = sphi %s351_s12, %s13_s12  }
   0x2   : > { %p137_p1 = scmp.lt.s32.totalorder %s329_s12, 3 }
   0x4   : > { %p138_p2 = pnand %p288_p0, %p137_p1 }
   0x5   : > { %p159_p3 = scmp.lt.s32.totalorder (!%p138_p2), %s284_s13, 1  ;;  %v291_v0 = vld [vmem:[%s379_s1] ss:$0 sm:$0xff] (!%p138_p2) }
   0x6   : > { %141 = sbr.rel (%p138_p2) target bundleno = 54 (0x36), region = 32  ;;  %v292_v12 = vld [vmem:[%s380_s2] ss:$0 sm:$0xff] (!%p138_p2) }
   0xd   : > { %s383_s13 = smov (!%p159_p3, %s284_s13), 1 }
   0xe   : > { %s295_s14 = sshll.u32 %s383_s13, 5  ;;  %s166_s24 = scalar_lea.vmem %s381_s3, %s383_s13 }
   0xf   : > { %s163_s17 = scalar_lea.vmem %s378_s0, %s295_s14 }
  0x10   : > { %v297_v1 = vld [vmem:[%s163_s17] sm:$0xff]   ;;  %v312_v2 = vld [vmem:[%s163_s17 + $0x8] sm:$0xff]   ;;  %v313_v3 = vld [vmem:[%s163_s17 + $0x10] sm:$0xff]  }
  0x11   : > { %v298_v4 = vunpack.c.l.bf16 %v297_v1  ;;  %v299_v5 = vunpack.c.h.bf16 %v297_v1  ;;  %v302_v6 = vunpack.c.l.bf16 %v312_v2  ;;  %v303_v7 = vunpack.c.h.bf16 %v312_v2  ;;  %v314_v8 = vld [vmem:[%s163_s17 + $0x18] sm:$0xff]  }
  0x12   : > { %v306_v9 = vunpack.c.l.bf16 %v313_v3  ;;  %v307_v10 = vunpack.c.h.bf16 %v313_v3  ;;  %v310_v11 = vunpack.c.l.bf16 %v314_v8  ;;  %v311_v17 = vunpack.c.h.bf16 %v314_v8 }
  0x13   : > { %v190_v13 = vmul.f32 %v298_v4, %v291_v0  ;;  %v191_v14 = vmul.f32 %v299_v5, %v291_v0  ;;  %v192_v15 = vmul.f32 %v302_v6, %v291_v0  ;;  %v193_v16 = vmul.f32 %v303_v7, %v291_v0 }
  0x14   : > { %v194_v18 = vmul.f32 %v306_v9, %v291_v0  ;;  %v195_v19 = vmul.f32 %v307_v10, %v291_v0  ;;  %v196_v24 = vmul.f32 %v310_v11, %v291_v0  ;;  %v197_v29 = vmul.f32 %v311_v17, %v291_v0 }
  0x15   : > { %v205_v20 = vadd.f32 %v292_v12, %v190_v13  ;;  %v206_v21 = vadd.f32 %v292_v12, %v191_v14  ;;  %v207_v22 = vadd.f32 %v292_v12, %v192_v15  ;;  %v208_v23 = vadd.f32 %v292_v12, %v193_v16 }
  0x16   : > { %v209_v25 = vadd.f32 %v292_v12, %v194_v18  ;;  %v210_v30 = vadd.f32 %v292_v12, %v195_v19  ;;  %v211_v33 = vadd.f32 %v292_v12, %v196_v24  ;;  %v212_v36 = vadd.f32 %v292_v12, %v197_v29 }
  0x17   : > { %v213_v26 = vmax.f32 %v205_v20, 0.0  ;;  %v214_v27 = vmax.f32 %v206_v21, 0.0  ;;  %v215_v28 = vmax.f32 %v207_v22, 0.0  ;;  %v216_v31 = vmax.f32 %v208_v23, 0.0 }
  0x18   : > { %v217_v34 = vmax.f32 %v209_v25, 0.0  ;;  %v218_v37 = vmax.f32 %v210_v30, 0.0  ;;  %v219_v39 = vmax.f32 %v211_v33, 0.0  ;;  %v220_v41 = vmax.f32 %v212_v36, 0.0 }
  0x19   : > { %v221_v32 = vadd.f32 %v214_v27, %v213_v26 }
  0x1b   : > { %v222_v35 = vadd.f32 %v221_v32, %v215_v28 }
  0x1d   : > { %v223_v38 = vadd.f32 %v222_v35, %v216_v31 }
  0x1f   : > { %v224_v40 = vadd.f32 %v223_v38, %v217_v34 }
  0x21   : > { %v225_v42 = vadd.f32 %v224_v40, %v218_v37 }
  0x23   : > { %v226_v43 = vadd.f32 %v225_v42, %v219_v39 }
  0x25   : > { %v227_v44 = vadd.f32 %v226_v43, %v220_v41 }
  0x27   : > { %v228_v45 = vrot.slane %v227_v44, 4 }
  0x29   : > { %v229_v46 = vadd.f32 %v228_v45, %v227_v44 }
  0x2b   : > { %v230_v47 = vrot.slane %v229_v46, 2 }
  0x2d   : > { %v231_v48 = vadd.f32 %v230_v47, %v229_v46 }
  0x2f   : > { %v232_v49 = vrot.slane %v231_v48, 1 }
  0x31   : > { %v233_v50 = vadd.f32 %v232_v49, %v231_v48 }
  0x33   : > { %v235_v51 = vmul.f32 0.015625, %v233_v50 }
  0x35   : > { %236 = vst [vmem:[%s166_s24] sm:$0x1] %v235_v51 }
  0x36 PF: > { %s13_s12 = sadd.s32 1, %s329_s12  }
  0x37   : > { %p10_p4 = scmp.ge.s32.totalorder %s13_s12, 4  }
  0x39   :  { %12 = sbr.rel (!%p10_p4) target bundleno = 1 (0x1), region = 62 }

// kernel: bottleneck_forward.10
= control target key start
LH: loop header
LB: loop body
LE: loop exit
PB: predicated region body
PF: predicated region fallthrough
CT: control target
= control target key end

     0   :  { %vm103_vm0 = vcmask 523264   ;;  %s631_s1 = inlined_call_operand.vmem [shape: bf16[64,128], index: 1, kind: input, shape index: {}]   ;;  %s632_s0 = inlined_call_operand.vmem [shape: bf16[128,64], index: 0, kind: input, shape index: {}]   ;;  %s633_s2 = inlined_call_operand.vmem [shape: bf16[128,128], index: 2, kind: output, shape index: {0}]   ;;  %s634_s3 = inlined_call_operand.vmem [shape: f32[1,1,128], index: 3, kind: output, shape index: {1}]   ;;  %s635_s4 = inlined_call_operand.vmem [shape: f32[1,1,128], index: 4, kind: output, shape index: {2}]  }
   0x1   :  { %v520_v0 = vld [vmem:[%s631_s1] sm:$0xff]   ;;  %v521_v1 = vld [vmem:[%s631_s1 + $0x8] sm:$0xff]   ;;  %v522_v2 = vld [vmem:[%s631_s1 + $0x10] sm:$0xff]  }
   0x2   :  { %488 = vmatprep.subr.bf16.mxu0 %v520_v0  ;;  %512 = vmatprep.subr.bf16.mxu1 %v520_v0  ;;  %v524_v3 = vld [vmem:[%s632_s0] sm:$0xff]   ;;  %v523_v4 = vld [vmem:[%s631_s1 + $0x18] sm:$0xff]   ;;  %v525_v6 = vld [vmem:[%s632_s0 + $0x8] sm:$0xff]  }
   0x3   :  { %489 = vmatpush3.bf16.msra.mxu0 %v520_v0  ;;  %516 = vmatpush3.bf16.msra.mxu1 %v520_v0  ;;  %v528_v5 = vld [vmem:[%s632_s0 + $0x20] sm:$0xff]   ;;  %v529_v7 = vld [vmem:[%s632_s0 + $0x28] sm:$0xff]   ;;  %v526_v8 = vld [vmem:[%s632_s0 + $0x10] sm:$0xff]  }
   0x4   :  { %490 = vmatprep.subr.bf16.mxu0 %v521_v1  ;;  %513 = vmatprep.subr.bf16.mxu1 %v521_v1  ;;  %v530_v9 = vld [vmem:[%s632_s0 + $0x30] sm:$0xff]   ;;  %v527_v10 = vld [vmem:[%s632_s0 + $0x18] sm:$0xff]  }
   0x5   :  { %496 = vmatprep.mubr.msk.bf16.mxu0 %vm103_vm0, %v524_v3  ;;  %504 = vmatprep.mubr.msk.bf16.mxu1 %vm103_vm0, %v528_v5  ;;  %v531_v11 = vld [vmem:[%s632_s0 + $0x38] sm:$0xff]  }
   0x7   :  { %491 = vmatpush3.bf16.msra.mxu0 %v521_v1  ;;  %517 = vmatpush3.bf16.msra.mxu1 %v521_v1 }
   0x8   :  { %492 = vmatprep.subr.bf16.mxu0 %v522_v2  ;;  %514 = vmatprep.subr.bf16.mxu1 %v522_v2 }
   0xb   :  { %493 = vmatpush3.bf16.msra.mxu0 %v522_v2  ;;  %518 = vmatpush3.bf16.msra.mxu1 %v522_v2 }
   0xc   :  { %494 = vmatprep.subr.bf16.mxu0 %v523_v4  ;;  %515 = vmatprep.subr.bf16.mxu1 %v523_v4 }
   0xf   :  { %495 = vmatpush3.bf16.msra.mxu0 %v523_v4  ;;  %519 = vmatpush3.bf16.msra.mxu1 %v523_v4 }
  0x12   :  { %497 = vmatmul.mubr.msk.bf16.vlgmr.msra.gmra.mrb[0].mxu0 %vm103_vm0, %v525_v6  ;;  %505 = vmatmul.mubr.msk.bf16.vlgmr.msra.gmra.mrb[0].mxu1 %vm103_vm0, %v529_v7 }
  0x13   :  { %500 = vmatprep.mubr.msk.bf16.mxu0 %vm103_vm0, %v526_v8  ;;  %508 = vmatprep.mubr.msk.bf16.mxu1 %vm103_vm0, %v530_v9 }
  0x1a   :  { %501 = vmatmul.mubr.msk.bf16.gmra.mrb[4].mxu0 %vm103_vm0, %v527_v10  ;;  %509 = vmatmul.mubr.msk.bf16.gmra.mrb[4].mxu1 %vm103_vm0, %v531_v11 }
  0xe5   :  { %v498_v12 = vpop.f32.mrb[0].mxu0  ;;  %v506_v13 = vpop.f32.mrb[0].mxu1 }
  0xe6   :  { %v162_v14 = vpop.f32.mrb[1].mxu0  ;;  %v194_v15 = vpop.f32.mrb[1].mxu1  ;;  %v329_v27 = vmul.f32 %v498_v12, %v498_v12  ;;  %v337_v63 = vmul.f32 %v506_v13, %v506_v13 }
  0xe7   :  { %v499_v16 = vpop.f32.mrb[2].mxu0  ;;  %v507_v17 = vpop.f32.mrb[2].mxu1  ;;  %v327_v18 = vmul.f32 %v162_v14, %v162_v14  ;;  %v335_v57 = vmul.f32 %v194_v15, %v194_v15 }
  0xe8   :  { %v437_v19 = vpack.c.bf16 %v499_v16, %v498_v12  ;;  %v165_v20 = vpop.f32.mrb[3].mxu0  ;;  %v457_v21 = vpack.c.bf16 %v507_v17, %v506_v13  ;;  %v197_v22 = vpop.f32.mrb[3].mxu1  ;;  %v330_v30 = vmul.f32 %v499_v16, %v499_v16  ;;  %v338_v2 = vmul.f32 %v507_v17, %v507_v17 }
  0xe9   :  { %v432_v23 = vpack.c.bf16 %v165_v20, %v162_v14  ;;  %v305_v24 = vadd.f32 %v165_v20, %v162_v14  ;;  %v328_v25 = vmul.f32 %v165_v20, %v165_v20  ;;  %v452_v26 = vpack.c.bf16 %v197_v22, %v194_v15 }
  0xea   :  { %469 = vst [vmem:[%s633_s2 + $0x8] sm:$0xff] %v437_v19   ;;  %473 = vst [vmem:[%s633_s2 + $0x28] sm:$0xff] %v457_v21   ;;  %v336_v62 = vmul.f32 %v197_v22, %v197_v22 }
  0xeb   :  { %433 = vst [vmem:[%s633_s2] sm:$0xff] %v432_v23   ;;  %v306_v28 = vadd.f32 %v498_v12, %v305_v24  ;;  %v343_v29 = vadd.f32 %v328_v25, %v327_v18  ;;  %472 = vst [vmem:[%s633_s2 + $0x20] sm:$0xff] %v452_v26  }
  0xed   :  { %v344_v31 = vadd.f32 %v343_v29, %v329_v27  ;;  %v502_v32 = vpop.f32.mrb[4].mxu0  ;;  %v307_v33 = vadd.f32 %v499_v16, %v306_v28  ;;  %v510_v34 = vpop.f32.mrb[4].mxu1 }
  0xee   :  { %v178_v35 = vpop.f32.mrb[5].mxu0  ;;  %v210_v36 = vpop.f32.mrb[5].mxu1  ;;  %v333_v51 = vmul.f32 %v502_v32, %v502_v32  ;;  %v341_v11 = vmul.f32 %v510_v34, %v510_v34 }
  0xef   :  { %v308_v37 = vadd.f32 %v307_v33, %v178_v35  ;;  %v331_v38 = vmul.f32 %v178_v35, %v178_v35  ;;  %v345_v39 = vadd.f32 %v344_v31, %v330_v30  ;;  %v503_v40 = vpop.f32.mrb[6].mxu0  ;;  %v511_v41 = vpop.f32.mrb[6].mxu1  ;;  %v339_v5 = vmul.f32 %v210_v36, %v210_v36 }
  0xf0   :  { %v447_v42 = vpack.c.bf16 %v503_v40, %v502_v32  ;;  %v181_v43 = vpop.f32.mrb[7].mxu0  ;;  %v467_v44 = vpack.c.bf16 %v511_v41, %v510_v34  ;;  %v213_v45 = vpop.f32.mrb[7].mxu1  ;;  %v334_v54 = vmul.f32 %v503_v40, %v503_v40 }
  0xf1   :  { %v346_v46 = vadd.f32 %v345_v39, %v331_v38  ;;  %v442_v47 = vpack.c.bf16 %v181_v43, %v178_v35  ;;  %v309_v48 = vadd.f32 %v308_v37, %v181_v43  ;;  %v332_v49 = vmul.f32 %v181_v43, %v181_v43 }
  0xf2   :  { %471 = vst [vmem:[%s633_s2 + $0x18] sm:$0xff] %v447_v42   ;;  %475 = vst [vmem:[%s633_s2 + $0x38] sm:$0xff] %v467_v44   ;;  %v462_v50 = vpack.c.bf16 %v213_v45, %v210_v36  ;;  %v340_v10 = vmul.f32 %v213_v45, %v213_v45 }
  0xf3   :  { %470 = vst [vmem:[%s633_s2 + $0x10] sm:$0xff] %v442_v47   ;;  %v310_v52 = vadd.f32 %v502_v32, %v309_v48  ;;  %v347_v53 = vadd.f32 %v346_v46, %v332_v49 }
  0xf4   :  { %474 = vst [vmem:[%s633_s2 + $0x30] sm:$0xff] %v462_v50  }
  0xf5   :  { %v348_v55 = vadd.f32 %v347_v53, %v333_v51  ;;  %v311_v56 = vadd.f32 %v503_v40, %v310_v52 }
  0xf7   :  { %v312_v58 = vadd.f32 %v311_v56, %v194_v15  ;;  %v349_v59 = vadd.f32 %v348_v55, %v334_v54  ;;  %v342_v15 = vmul.f32 %v511_v41, %v511_v41 }
  0xf9   :  { %v350_v60 = vadd.f32 %v349_v59, %v335_v57  ;;  %v313_v61 = vadd.f32 %v312_v58, %v197_v22 }
  0xfb   :  { %v314_v0 = vadd.f32 %v506_v13, %v313_v61  ;;  %v351_v1 = vadd.f32 %v350_v60, %v336_v62 }
  0xfd   :  { %v352_v3 = vadd.f32 %v351_v1, %v337_v63  ;;  %v315_v4 = vadd.f32 %v507_v17, %v314_v0 }
  0xff   :  { %v316_v6 = vadd.f32 %v315_v4, %v210_v36  ;;  %v353_v7 = vadd.f32 %v352_v3, %v338_v2 }
 0x101   :  { %v354_v8 = vadd.f32 %v353_v7, %v339_v5  ;;  %v317_v9 = vadd.f32 %v316_v6, %v213_v45 }
 0x103   :  { %v318_v12 = vadd.f32 %v510_v34, %v317_v9  ;;  %v355_v14 = vadd.f32 %v354_v8, %v340_v10 }
 0x105   :  { %v319_v16 = vadd.f32 %v511_v41, %v318_v12  ;;  %v356_v18 = vadd.f32 %v355_v14, %v341_v11 }
 0x107   :  { %v320_v19 = vrot.slane %v319_v16, 4  ;;  %v357_v20 = vadd.f32 %v356_v18, %v342_v15 }
 0x109   :  { %v321_v21 = vadd.f32 %v320_v19, %v319_v16  ;;  %v358_v13 = vrot.slane %v357_v20, 4 }
 0x10b   :  { %v322_v22 = vrot.slane %v321_v21, 2  ;;  %v359_v23 = vadd.f32 %v358_v13, %v357_v20 }
 0x10d   :  { %v323_v24 = vadd.f32 %v322_v22, %v321_v21  ;;  %v360_v17 = vrot.slane %v359_v23, 2 }
 0x10f   :  { %v324_v25 = vrot.slane %v323_v24, 1  ;;  %v361_v26 = vadd.f32 %v360_v17, %v359_v23 }
 0x111   :  { %v325_v27 = vadd.f32 %v324_v25, %v323_v24  ;;  %v362_v28 = vrot.slane %v361_v26, 1 }
 0x113   :  { %326 = vst [vmem:[%s634_s3] sm:$0x1] %v325_v27  ;;  %v363_v29 = vadd.f32 %v362_v28, %v361_v26 }
 0x115   :  { %364 = vst [vmem:[%s635_s4] sm:$0x1] %v363_v29 }

// kernel: bottleneck_forward.9
= control target key start
LH: loop header
LB: loop body
LE: loop exit
PB: predicated region body
PF: predicated region fallthrough
CT: control target
= control target key end

     0   :  { %s791_s3 = inlined_call_operand.vmem [shape: bf16[128,128], index: 3, kind: input, shape index: {}]   ;;  %s792_s0 = inlined_call_operand.vmem [shape: bf16[128,128], index: 0, kind: input, shape index: {}]   ;;  %s793_s1 = inlined_call_operand.vmem [shape: f32[1,128], index: 1, kind: input, shape index: {}]   ;;  %s794_s2 = inlined_call_operand.vmem [shape: f32[1,128], index: 2, kind: input, shape index: {}]   ;;  %s795_s4 = inlined_call_operand.vmem [shape: bf16[128,128], index: 4, kind: output, shape index: {0}]   ;;  %s796_s5 = inlined_call_operand.vmem [shape: f32[1,1,128], index: 5, kind: output, shape index: {1}]   ;;  %s797_s6 = inlined_call_operand.vmem [shape: f32[1,1,128], index: 6, kind: output, shape index: {2}]  }
   0x1   :  { %v628_v0 = vld [vmem:[%s791_s3] sm:$0xff]   ;;  %v629_v1 = vld [vmem:[%s791_s3 + $0x8] sm:$0xff]   ;;  %v630_v2 = vld [vmem:[%s791_s3 + $0x10] sm:$0xff]  }
   0x2   :  { %580 = vmatprep.subr.bf16.mxu0 %v628_v0  ;;  %612 = vmatprep.subr.bf16.mxu1 %v628_v0  ;;  %v631_v3 = vld [vmem:[%s791_s3 + $0x18] sm:$0xff]   ;;  %v479_v4 = vld [vmem:[%s792_s0] sm:$0xff]   ;;  %v550_v8 = vld [vmem:[%s792_s0 + $0x8] sm:$0xff]  }
   0x3   :  { %581 = vmatpush3.bf16.msra.mxu0 %v628_v0  ;;  %620 = vmatpush3.bf16.msra.mxu1 %v628_v0  ;;  %v689_v5 = vld [vmem:[%s793_s1] ss:$0 sm:$0xff]  ;;  %v480_v6 = vunpack.c.l.bf16 %v479_v4  ;;  %v481_v7 = vunpack.c.h.bf16 %v479_v4  ;;  %v551_v9 = vld [vmem:[%s792_s0 + $0x10] sm:$0xff]   ;;  %v484_v11 = vunpack.c.l.bf16 %v550_v8  ;;  %v485_v14 = vunpack.c.h.bf16 %v550_v8  ;;  %v552_v22 = vld [vmem:[%s792_s0 + $0x18] sm:$0xff]  }
   0x4   :  { %582 = vmatprep.subr.bf16.mxu0 %v629_v1  ;;  %613 = vmatprep.subr.bf16.mxu1 %v629_v1  ;;  %v700_v10 = vld [vmem:[%s794_s2] ss:$0 sm:$0xff]  ;;  %v488_v17 = vunpack.c.l.bf16 %v551_v9  ;;  %v489_v21 = vunpack.c.h.bf16 %v551_v9  ;;  %v554_v27 = vld [vmem:[%s792_s0 + $0x28] sm:$0xff]   ;;  %v555_v30 = vld [vmem:[%s792_s0 + $0x30] sm:$0xff]   ;;  %v492_v32 = vunpack.c.l.bf16 %v552_v22  ;;  %v493_v33 = vunpack.c.h.bf16 %v552_v22 }
   0x5   :  { %v60_v12 = vmul.f32 %v480_v6, %v689_v5  ;;  %v61_v13 = vmul.f32 %v481_v7, %v689_v5  ;;  %v553_v15 = vld [vmem:[%s792_s0 + $0x20] sm:$0xff]   ;;  %v62_v20 = vmul.f32 %v484_v11, %v689_v5  ;;  %v63_v26 = vmul.f32 %v485_v14, %v689_v5  ;;  %v633_v28 = vld [vmem:[%s791_s3 + $0x28] sm:$0xff]   ;;  %v556_v39 = vld [vmem:[%s792_s0 + $0x38] sm:$0xff]  }
   0x6   :  { %v632_v16 = vld [vmem:[%s791_s3 + $0x20] sm:$0xff]   ;;  %v496_v23 = vunpack.c.l.bf16 %v553_v15  ;;  %v64_v29 = vmul.f32 %v488_v17, %v689_v5  ;;  %v497_v34 = vunpack.c.h.bf16 %v553_v15  ;;  %v65_v36 = vmul.f32 %v489_v21, %v689_v5  ;;  %v634_v44 = vld [vmem:[%s791_s3 + $0x30] sm:$0xff]   ;;  %v635_v61 = vld [vmem:[%s791_s3 + $0x38] sm:$0xff]  }
   0x7   :  { %583 = vmatpush3.bf16.msra.mxu0 %v629_v1  ;;  %621 = vmatpush3.bf16.msra.mxu1 %v629_v1  ;;  %v83_v18 = vadd.f32 %v700_v10, %v60_v12  ;;  %v84_v19 = vadd.f32 %v700_v10, %v61_v13  ;;  %v85_v35 = vadd.f32 %v700_v10, %v62_v20  ;;  %v500_v38 = vunpack.c.l.bf16 %v554_v27 }
   0x8   :  { %584 = vmatprep.subr.bf16.mxu0 %v630_v2  ;;  %614 = vmatprep.subr.bf16.mxu1 %v630_v2  ;;  %v68_v37 = vmul.f32 %v496_v23, %v689_v5  ;;  %v86_v40 = vadd.f32 %v700_v10, %v63_v26  ;;  %v69_v41 = vmul.f32 %v497_v34, %v689_v5  ;;  %v501_v42 = vunpack.c.h.bf16 %v554_v27 }
   0x9   :  { %v99_v24 = vmax.f32 %v83_v18, 0.0  ;;  %v100_v25 = vmax.f32 %v84_v19, 0.0  ;;  %v504_v43 = vunpack.c.l.bf16 %v555_v30  ;;  %v87_v45 = vadd.f32 %v700_v10, %v64_v29 }
   0xa   :  { %v91_v46 = vadd.f32 %v700_v10, %v68_v37  ;;  %v70_v47 = vmul.f32 %v500_v38, %v689_v5  ;;  %v505_v48 = vunpack.c.h.bf16 %v555_v30  ;;  %v92_v49 = vadd.f32 %v700_v10, %v69_v41 }
   0xb   :  { %585 = vmatpush3.bf16.msra.mxu0 %v630_v2  ;;  %622 = vmatpush3.bf16.msra.mxu1 %v630_v2  ;;  %v115_v31 = vpack.c.bf16 %v100_v25, %v99_v24  ;;  %v71_v50 = vmul.f32 %v501_v42, %v689_v5  ;;  %v72_v51 = vmul.f32 %v504_v43, %v689_v5  ;;  %v508_v52 = vunpack.c.l.bf16 %v556_v39 }
   0xc   :  { %586 = vmatprep.subr.bf16.mxu0 %v631_v3  ;;  %615 = vmatprep.subr.bf16.mxu1 %v631_v3  ;;  %v107_v53 = vmax.f32 %v91_v46, 0.0  ;;  %v93_v54 = vadd.f32 %v700_v10, %v70_v47  ;;  %v73_v55 = vmul.f32 %v505_v48, %v689_v5  ;;  %v509_v56 = vunpack.c.h.bf16 %v556_v39 }
   0xd   :  { %596 = vmatprep.mubr.bf16.mxu0 %v115_v31  ;;  %v88_v57 = vadd.f32 %v700_v10, %v65_v36  ;;  %v108_v58 = vmax.f32 %v92_v49, 0.0  ;;  %v94_v59 = vadd.f32 %v700_v10, %v71_v50  ;;  %v95_v60 = vadd.f32 %v700_v10, %v72_v51 }
   0xe   :  { %v66_v62 = vmul.f32 %v492_v32, %v689_v5  ;;  %v96_v63 = vadd.f32 %v700_v10, %v73_v55  ;;  %v101_v0 = vmax.f32 %v85_v35, 0.0  ;;  %v102_v1 = vmax.f32 %v86_v40, 0.0 }
   0xf   :  { %587 = vmatpush3.bf16.msra.mxu0 %v631_v3  ;;  %623 = vmatpush3.bf16.msra.mxu1 %v631_v3  ;;  %v67_v2 = vmul.f32 %v493_v33, %v689_v5  ;;  %v119_v3 = vpack.c.bf16 %v108_v58, %v107_v53  ;;  %v109_v4 = vmax.f32 %v93_v54, 0.0  ;;  %v110_v6 = vmax.f32 %v94_v59, 0.0 }
  0x10   :  { %588 = vmatprep.subr.bf16.mxu0 %v632_v16  ;;  %616 = vmatprep.subr.bf16.mxu1 %v632_v16  ;;  %v74_v7 = vmul.f32 %v508_v52, %v689_v5  ;;  %v75_v8 = vmul.f32 %v509_v56, %v689_v5  ;;  %v103_v9 = vmax.f32 %v87_v45, 0.0  ;;  %v104_v11 = vmax.f32 %v88_v57, 0.0 }
  0x11   :  { %v111_v12 = vmax.f32 %v95_v60, 0.0  ;;  %v112_v13 = vmax.f32 %v96_v63, 0.0  ;;  %v89_v14 = vadd.f32 %v700_v10, %v66_v62  ;;  %v90_v15 = vadd.f32 %v700_v10, %v67_v2  ;;  %604 = vmatprep.mubr.bf16.mxu1 %v119_v3 }
  0x12   :  { %v120_v17 = vpack.c.bf16 %v110_v6, %v109_v4  ;;  %v97_v18 = vadd.f32 %v700_v10, %v74_v7  ;;  %v98_v19 = vadd.f32 %v700_v10, %v75_v8  ;;  %v117_v5 = vpack.c.bf16 %v104_v11, %v103_v9 }
  0x13   :  { %589 = vmatpush3.bf16.msra.mxu0 %v632_v16  ;;  %624 = vmatpush3.bf16.msra.mxu1 %v632_v16  ;;  %v116_v16 = vpack.c.bf16 %v102_v1, %v101_v0  ;;  %v121_v20 = vpack.c.bf16 %v112_v13, %v111_v12  ;;  %v105_v21 = vmax.f32 %v89_v14, 0.0  ;;  %v106_v22 = vmax.f32 %v90_v15, 0.0 }
  0x14   :  { %590 = vmatprep.subr.bf16.mxu0 %v633_v28  ;;  %617 = vmatprep.subr.bf16.mxu1 %v633_v28  ;;  %v113_v23 = vmax.f32 %v97_v18, 0.0  ;;  %v114_v24 = vmax.f32 %v98_v19, 0.0 }
  0x15   :  { %v118_v25 = vpack.c.bf16 %v106_v22, %v105_v21 }
  0x16   :  { %v122_v26 = vpack.c.bf16 %v114_v24, %v113_v23 }
  0x17   :  { %591 = vmatpush3.bf16.msra.mxu0 %v633_v28  ;;  %625 = vmatpush3.bf16.msra.mxu1 %v633_v28 }
  0x18   :  { %592 = vmatprep.subr.bf16.mxu0 %v634_v44  ;;  %618 = vmatprep.subr.bf16.mxu1 %v634_v44 }
  0x1b   :  { %593 = vmatpush3.bf16.msra.mxu0 %v634_v44  ;;  %626 = vmatpush3.bf16.msra.mxu1 %v634_v44 }
  0x1c   :  { %594 = vmatprep.subr.bf16.mxu0 %v635_v61  ;;  %619 = vmatprep.subr.bf16.mxu1 %v635_v61 }
  0x1f   :  { %595 = vmatpush3.bf16.msra.mxu0 %v635_v61  ;;  %627 = vmatpush3.bf16.msra.mxu1 %v635_v61 }
  0x22   :  { %597 = vmatmul.mubr.bf16.vlgmr.msra.gmra.mrb[0].mxu0 %v116_v16  ;;  %605 = vmatmul.mubr.bf16.vlgmr.msra.gmra.mrb[0].mxu1 %v120_v17 }
  0x23   :  { %600 = vmatprep.mubr.bf16.mxu0 %v117_v5  ;;  %608 = vmatprep.mubr.bf16.mxu1 %v121_v20 }
  0x2a   :  { %601 = vmatmul.mubr.bf16.gmra.mrb[4].mxu0 %v118_v25  ;;  %609 = vmatmul.mubr.bf16.gmra.mrb[4].mxu1 %v122_v26 }
  0xf5   :  { %v598_v27 = vpop.f32.mrb[0].mxu0  ;;  %v606_v28 = vpop.f32.mrb[0].mxu1 }
  0xf6   :  { %v221_v29 = vpop.f32.mrb[1].mxu0  ;;  %v253_v10 = vpop.f32.mrb[1].mxu1  ;;  %v388_v41 = vmul.f32 %v598_v27, %v598_v27  ;;  %v396_v15 = vmul.f32 %v606_v28, %v606_v28 }
  0xf7   :  { %v599_v30 = vpop.f32.mrb[2].mxu0  ;;  %v607_v31 = vpop.f32.mrb[2].mxu1  ;;  %v386_v32 = vmul.f32 %v221_v29, %v221_v29  ;;  %v394_v8 = vmul.f32 %v253_v10, %v253_v10 }
  0xf8   :  { %v518_v33 = vpack.c.bf16 %v599_v30, %v598_v27  ;;  %v224_v34 = vpop.f32.mrb[3].mxu0  ;;  %v538_v35 = vpack.c.bf16 %v607_v31, %v606_v28  ;;  %v256_v36 = vpop.f32.mrb[3].mxu1  ;;  %v389_v44 = vmul.f32 %v599_v30, %v599_v30  ;;  %v397_v18 = vmul.f32 %v607_v31, %v607_v31 }
  0xf9   :  { %v513_v37 = vpack.c.bf16 %v224_v34, %v221_v29  ;;  %v364_v38 = vadd.f32 %v224_v34, %v221_v29  ;;  %v387_v39 = vmul.f32 %v224_v34, %v224_v34  ;;  %v533_v40 = vpack.c.bf16 %v256_v36, %v253_v10 }
  0xfa   :  { %557 = vst [vmem:[%s795_s4 + $0x8] sm:$0xff] %v518_v33   ;;  %561 = vst [vmem:[%s795_s4 + $0x28] sm:$0xff] %v538_v35   ;;  %v395_v14 = vmul.f32 %v256_v36, %v256_v36 }
  0xfb   :  { %514 = vst [vmem:[%s795_s4] sm:$0xff] %v513_v37   ;;  %v365_v42 = vadd.f32 %v598_v27, %v364_v38  ;;  %v402_v43 = vadd.f32 %v387_v39, %v386_v32  ;;  %560 = vst [vmem:[%s795_s4 + $0x20] sm:$0xff] %v533_v40  }
  0xfd   :  { %v403_v45 = vadd.f32 %v402_v43, %v388_v41  ;;  %v602_v46 = vpop.f32.mrb[4].mxu0  ;;  %v366_v47 = vadd.f32 %v599_v30, %v365_v42  ;;  %v610_v48 = vpop.f32.mrb[4].mxu1 }
  0xfe   :  { %v237_v49 = vpop.f32.mrb[5].mxu0  ;;  %v269_v50 = vpop.f32.mrb[5].mxu1  ;;  %v392_v1 = vmul.f32 %v602_v46, %v602_v46  ;;  %v400_v26 = vmul.f32 %v610_v48, %v610_v48 }
  0xff   :  { %v367_v51 = vadd.f32 %v366_v47, %v237_v49  ;;  %v390_v52 = vmul.f32 %v237_v49, %v237_v49  ;;  %v404_v53 = vadd.f32 %v403_v45, %v389_v44  ;;  %v603_v54 = vpop.f32.mrb[6].mxu0  ;;  %v611_v55 = vpop.f32.mrb[6].mxu1  ;;  %v398_v20 = vmul.f32 %v269_v50, %v269_v50 }
 0x100   :  { %v528_v56 = vpack.c.bf16 %v603_v54, %v602_v46  ;;  %v240_v57 = vpop.f32.mrb[7].mxu0  ;;  %v548_v58 = vpack.c.bf16 %v611_v55, %v610_v48  ;;  %v272_v59 = vpop.f32.mrb[7].mxu1  ;;  %v393_v4 = vmul.f32 %v603_v54, %v603_v54 }
 0x101   :  { %v405_v60 = vadd.f32 %v404_v53, %v390_v52  ;;  %v523_v61 = vpack.c.bf16 %v240_v57, %v237_v49  ;;  %v368_v62 = vadd.f32 %v367_v51, %v240_v57  ;;  %v391_v63 = vmul.f32 %v240_v57, %v240_v57 }
 0x102   :  { %559 = vst [vmem:[%s795_s4 + $0x18] sm:$0xff] %v528_v56   ;;  %563 = vst [vmem:[%s795_s4 + $0x38] sm:$0xff] %v548_v58   ;;  %v543_v0 = vpack.c.bf16 %v272_v59, %v269_v50  ;;  %v399_v25 = vmul.f32 %v272_v59, %v272_v59 }
 0x103   :  { %558 = vst [vmem:[%s795_s4 + $0x10] sm:$0xff] %v523_v61   ;;  %v369_v2 = vadd.f32 %v602_v46, %v368_v62  ;;  %v406_v3 = vadd.f32 %v405_v60, %v391_v63 }
 0x104   :  { %562 = vst [vmem:[%s795_s4 + $0x30] sm:$0xff] %v543_v0  }
 0x105   :  { %v407_v6 = vadd.f32 %v406_v3, %v392_v1  ;;  %v370_v7 = vadd.f32 %v603_v54, %v369_v2 }
 0x107   :  { %v371_v9 = vadd.f32 %v370_v7, %v253_v10  ;;  %v408_v11 = vadd.f32 %v407_v6, %v393_v4  ;;  %v401_v10 = vmul.f32 %v611_v55, %v611_v55 }
 0x109   :  { %v409_v12 = vadd.f32 %v408_v11, %v394_v8  ;;  %v372_v13 = vadd.f32 %v371_v9, %v256_v36 }
 0x10b   :  { %v373_v16 = vadd.f32 %v606_v28, %v372_v13  ;;  %v410_v17 = vadd.f32 %v409_v12, %v395_v14 }
 0x10d   :  { %v411_v19 = vadd.f32 %v410_v17, %v396_v15  ;;  %v374_v5 = vadd.f32 %v607_v31, %v373_v16 }
 0x10f   :  { %v375_v21 = vadd.f32 %v374_v5, %v269_v50  ;;  %v412_v22 = vadd.f32 %v411_v19, %v397_v18 }
 0x111   :  { %v413_v23 = vadd.f32 %v412_v22, %v398_v20  ;;  %v376_v24 = vadd.f32 %v375_v21, %v272_v59 }
 0x113   :  { %v377_v27 = vadd.f32 %v610_v48, %v376_v24  ;;  %v414_v29 = vadd.f32 %v413_v23, %v399_v25 }
 0x115   :  { %v378_v30 = vadd.f32 %v611_v55, %v377_v27  ;;  %v415_v32 = vadd.f32 %v414_v29, %v400_v26 }
 0x117   :  { %v379_v33 = vrot.slane %v378_v30, 4  ;;  %v416_v34 = vadd.f32 %v415_v32, %v401_v10 }
 0x119   :  { %v380_v35 = vadd.f32 %v379_v33, %v378_v30  ;;  %v417_v28 = vrot.slane %v416_v34, 4 }
 0x11b   :  { %v381_v36 = vrot.slane %v380_v35, 2  ;;  %v418_v37 = vadd.f32 %v417_v28, %v416_v34 }
 0x11d   :  { %v382_v38 = vadd.f32 %v381_v36, %v380_v35  ;;  %v419_v31 = vrot.slane %v418_v37, 2 }
 0x11f   :  { %v383_v39 = vrot.slane %v382_v38, 1  ;;  %v420_v40 = vadd.f32 %v419_v31, %v418_v37 }
 0x121   :  { %v384_v41 = vadd.f32 %v383_v39, %v382_v38  ;;  %v421_v42 = vrot.slane %v420_v40, 1 }
 0x123   :  { %385 = vst [vmem:[%s796_s5] sm:$0x1] %v384_v41  ;;  %v422_v43 = vadd.f32 %v421_v42, %v420_v40 }
 0x125   :  { %423 = vst [vmem:[%s797_s6] sm:$0x1] %v422_v43 }

// kernel: bottleneck_forward.12
= control target key start
LH: loop header
LB: loop body
LE: loop exit
PB: predicated region body
PF: predicated region fallthrough
CT: control target
= control target key end

     0   :  { %v335_v0 = vmov 0.0   ;;  %vm336_vm0 = vmmov 0   ;;  %s411_s1 = inlined_call_operand.vmem [shape: bf16[128,128], index: 1, kind: input, shape index: {}]   ;;  %s412_s2 = inlined_call_operand.vmem [shape: bf16[128,128], index: 2, kind: input, shape index: {}]   ;;  %s413_s0 = inlined_call_operand.vmem [shape: f32[8,128], index: 0, kind: input, shape index: {}]   ;;  %s414_s3 = inlined_call_operand.vmem [shape: f32[8,128], index: 3, kind: output, shape index: {}]  }
   0x1   :  { %273 = vmatprep.subr.bf16.mxu0 %v335_v0  ;;  %v315_v1 = vld [vmem:[%s411_s1] sm:$0xff]   ;;  %289 = vmatprep.mubr.msk.bf16.mxu0 %vm336_vm0, %v335_v0  ;;  %v316_v2 = vld [vmem:[%s411_s1 + $0x8] sm:$0xff]   ;;  %v317_v3 = vld [vmem:[%s411_s1 + $0x10] sm:$0xff]  }
   0x2   :  { %293 = vmatprep.subr.bf16.mxu1 %v335_v0  ;;  %309 = vmatprep.mubr.msk.bf16.mxu1 %vm336_vm0, %v335_v0  ;;  %v323_v4 = vld [vmem:[%s412_s2] sm:$0xff]   ;;  %v318_v5 = vld [vmem:[%s411_s1 + $0x18] sm:$0xff]   ;;  %v324_v6 = vld [vmem:[%s412_s2 + $0x8] sm:$0xff]  }
   0x3   :  { %274 = vmatpush3.bf16.msra.mxu0 %v315_v1  ;;  %294 = vmatpush3.bf16.msra.mxu1 %v323_v4  ;;  %v319_v7 = vld [vmem:[%s411_s1 + $0x20] sm:$0xff]   ;;  %v325_v8 = vld [vmem:[%s412_s2 + $0x10] sm:$0xff]   ;;  %v320_v9 = vld [vmem:[%s411_s1 + $0x28] sm:$0xff]  }
   0x4   :  { %275 = vmatprep.subr.bf16.mxu0 %v335_v0  ;;  %295 = vmatprep.subr.bf16.mxu1 %v335_v0  ;;  %v326_v10 = vld [vmem:[%s412_s2 + $0x18] sm:$0xff]   ;;  %v321_v11 = vld [vmem:[%s411_s1 + $0x30] sm:$0xff]   ;;  %v327_v12 = vld [vmem:[%s412_s2 + $0x20] sm:$0xff]  }
   0x5   :  { %v322_v13 = vld [vmem:[%s411_s1 + $0x38] sm:$0xff]   ;;  %v15_v14 = vld [vmem:[%s413_s0] sm:$0xff]  ;;  %v328_v15 = vld [vmem:[%s412_s2 + $0x28] sm:$0xff]  }
   0x6   :  { %v16_v16 = vpack.c.bf16 %v15_v14, %v15_v14  ;;  %v329_v17 = vld [vmem:[%s412_s2 + $0x30] sm:$0xff]   ;;  %v330_v18 = vld [vmem:[%s412_s2 + $0x38] sm:$0xff]  }
   0x7   :  { %276 = vmatpush3.bf16.msra.mxu0 %v316_v2  ;;  %296 = vmatpush3.bf16.msra.mxu1 %v324_v6 }
   0x8   :  { %277 = vmatprep.subr.bf16.mxu0 %v335_v0  ;;  %297 = vmatprep.subr.bf16.mxu1 %v335_v0 }
   0xb   :  { %278 = vmatpush3.bf16.msra.mxu0 %v317_v3  ;;  %298 = vmatpush3.bf16.msra.mxu1 %v325_v8 }
   0xc   :  { %279 = vmatprep.subr.bf16.mxu0 %v335_v0  ;;  %299 = vmatprep.subr.bf16.mxu1 %v335_v0 }
   0xf   :  { %280 = vmatpush3.bf16.msra.mxu0 %v318_v5  ;;  %300 = vmatpush3.bf16.msra.mxu1 %v326_v10 }
  0x10   :  { %281 = vmatprep.subr.bf16.mxu0 %v335_v0  ;;  %301 = vmatprep.subr.bf16.mxu1 %v335_v0 }
  0x13   :  { %282 = vmatpush3.bf16.msra.mxu0 %v319_v7  ;;  %302 = vmatpush3.bf16.msra.mxu1 %v327_v12 }
  0x14   :  { %283 = vmatprep.subr.bf16.mxu0 %v335_v0  ;;  %303 = vmatprep.subr.bf16.mxu1 %v335_v0 }
  0x17   :  { %284 = vmatpush3.bf16.msra.mxu0 %v320_v9  ;;  %304 = vmatpush3.bf16.msra.mxu1 %v328_v15 }
  0x18   :  { %285 = vmatprep.subr.bf16.mxu0 %v335_v0  ;;  %305 = vmatprep.subr.bf16.mxu1 %v335_v0 }
  0x1b   :  { %286 = vmatpush3.bf16.msra.mxu0 %v321_v11  ;;  %306 = vmatpush3.bf16.msra.mxu1 %v329_v17 }
  0x1c   :  { %287 = vmatprep.subr.bf16.mxu0 %v335_v0  ;;  %307 = vmatprep.subr.bf16.mxu1 %v335_v0 }
  0x1f   :  { %288 = vmatpush3.bf16.msra.mxu0 %v322_v13  ;;  %308 = vmatpush3.bf16.msra.mxu1 %v330_v18 }
  0x22   :  { %290 = vmatmul.mubr.bf16.vlgmr.msra.gmra.mrb[0].mxu0 %v16_v16 }
  0xf5   :  { %v115_v19 = vpop.f32.mrb[0].mxu0 }
  0xf6   :  { %v121_v20 = vmax.f32 %v115_v19, 0.0  ;;  %v291_v21 = vpop.f32.mrb[1].mxu0 }
  0xf7   :  { %v118_v22 = vpop.f32.mrb[2].mxu0 }
  0xf8   :  { %v122_v23 = vpack.c.bf16 %v121_v20, %v121_v20  ;;  %v292_v24 = vpop.f32.mrb[3].mxu0 }
  0xfa   :  { %310 = vmatmul.mubr.bf16.vlgmr.msra.gmra.mrb[0].mxu1 %v122_v23 }
 0x1cd   :  { %v221_v25 = vpop.f32.mrb[0].mxu1 }
 0x1ce   :  { %v227_v26 = vmax.f32 %v221_v25, 0.0  ;;  %v311_v27 = vpop.f32.mrb[1].mxu1 }
 0x1cf   :  { %v224_v28 = vpop.f32.mrb[2].mxu1 }
 0x1d0   :  { %v228_v29 = vsub.f32 0.0, %v227_v26  ;;  %v312_v30 = vpop.f32.mrb[3].mxu1 }
 0x1d2   :  { %v229_v31 = vmul.f32 1.442695, %v228_v29 }
 0x1d4   :  { %331 = vpow2.f32 %v229_v31 }
 0x1de   :  { %v332_v32 = vpop.eup %331 }
 0x1df   :  { %v231_v33 = vadd.f32 1.0, %v332_v32 }
 0x1e1   :  { %333 = vrcp.f32 %v231_v33 }
 0x1eb   :  { %v334_v34 = vpop.eup %333 }
 0x1ec   :  { %234 = vst [vmem:[%s414_s3] sm:$0xff] %v334_v34 }

// kernel: bottleneck_forward.8
= control target key start
LH: loop header
LB: loop body
LE: loop exit
PB: predicated region body
PF: predicated region fallthrough
CT: control target
= control target key end

     0   :  { %s2293_s21 = smov 0   ;;  %s2750_s0 = inlined_call_operand.vmem [shape: bf16[2,8,8,128], index: 0, kind: input, shape index: {}]   ;;  %s2751_s1 = inlined_call_operand.vmem [shape: f32[1,1,128], index: 1, kind: input, shape index: {}]   ;;  %s2752_s2 = inlined_call_operand.vmem [shape: f32[1,1,128], index: 2, kind: input, shape index: {}]   ;;  %s2753_s3 = inlined_call_operand.vmem [shape: bf16[3,384,128], index: 3, kind: input, shape index: {}]   ;;  %s2754_s4 = inlined_call_operand.vmem [shape: bf16[2,64,128], index: 4, kind: output, shape index: {0}]   ;;  %s2755_s5 = inlined_call_operand.vmem [shape: f32[2,1,128], index: 5, kind: output, shape index: {1}]   ;;  %s2756_s6 = inlined_call_operand.vmem [shape: f32[2,1,128], index: 6, kind: output, shape index: {2}]  }
   0x1 LB: > { %s1659_s22 = sadd.s32 4294967295, %s2255_s21   ;;  %p1663_p0 = scmp.ge.s32.totalorder %s2255_s21, 1  ;;  %s2255_s21 = sphi %s2293_s21, %s17_s21  }
   0x2   : > { %p217_p1 = scmp.lt.s32.totalorder %s2255_s21, 3 }
   0x4   : > { %p218_p2 = pnand %p1663_p0, %p217_p1 }
   0x5   : > { %v2177_v0 = vld [vmem:[%s2753_s3 + $0x100] sm:$0xff] (!%p218_p2)   ;;  %v2257_v3 = vmov (!%p218_p2), 0.0   ;;  %v2180_v4 = vld [vmem:[%s2753_s3 + $0x108] sm:$0xff] (!%p218_p2)   ;;  %v2183_v7 = vld [vmem:[%s2753_s3 + $0x110] sm:$0xff] (!%p218_p2)   ;;  %p253_p3 = scmp.lt.s32.totalorder (!%p218_p2), %s1659_s22, 1  ;;  %vm433_vm0 = vcmask (!%p218_p2), 1040384  }
   0x6   : > { %221 = sbr.rel (%p218_p2) target bundleno = 365 (0x16d), region = 36  ;;  %v2178_v1 = vld [vmem:[%s2753_s3 + $0x140] sm:$0xff] (!%p218_p2)   ;;  %1900 = vmatprep.subr.bf16.mxu0 (!%p218_p2), %v2177_v0  ;;  %325 = vst [vmem:[#allocation2 + $0x8] sm:$0x3] (!%p218_p2), %v2257_v3  ;;  %327 = vst [vmem:[#allocation2 + $0x18] sm:$0x3] (!%p218_p2), %v2257_v3 }
   0x7   : > { %v2179_v2 = vld [vmem:[%s2753_s3 + $0xc0] sm:$0xff] (!%p218_p2)   ;;  %329 = vst [vmem:[#allocation2 + $0x28] sm:$0x3] (!%p218_p2), %v2257_v3  ;;  %331 = vst [vmem:[#allocation2 + $0x38] sm:$0x3] (!%p218_p2), %v2257_v3  ;;  %2056 = vmatprep.subr.bf16.mxu1 (!%p218_p2), %v2178_v1  ;;  %v2181_v5 = vld [vmem:[%s2753_s3 + $0x148] sm:$0xff] (!%p218_p2)  }
   0x8   : > { %333 = vst [vmem:[#allocation2 + $0x48] sm:$0x3] (!%p218_p2), %v2257_v3  ;;  %335 = vst [vmem:[#allocation2 + $0x58] sm:$0x3] (!%p218_p2), %v2257_v3  ;;  %1901 = vmatpush3.bf16.msra.mxu0 (!%p218_p2), %v2179_v2  ;;  %2057 = vmatpush3.bf16.msra.mxu1 (!%p218_p2), %v2178_v1  ;;  %v2182_v6 = vld [vmem:[%s2753_s3 + $0xc8] sm:$0xff] (!%p218_p2)   ;;  %v2184_v8 = vld [vmem:[%s2753_s3 + $0x150] sm:$0xff] (!%p218_p2)  }
   0x9   : > { %337 = vst [vmem:[#allocation2 + $0x68] sm:$0x3] (!%p218_p2), %v2257_v3  ;;  %339 = vst [vmem:[#allocation2 + $0x78] sm:$0x3] (!%p218_p2), %v2257_v3  ;;  %1902 = vmatprep.subr.bf16.mxu0 (!%p218_p2), %v2180_v4  ;;  %2058 = vmatprep.subr.bf16.mxu1 (!%p218_p2), %v2181_v5  ;;  %v2185_v9 = vld [vmem:[%s2753_s3 + $0xd0] sm:$0xff] (!%p218_p2)   ;;  %v2186_v10 = vld [vmem:[%s2753_s3 + $0x118] sm:$0xff] (!%p218_p2)  }
   0xa   : > { %341 = vst [vmem:[#allocation2 + $0x88] sm:$0x3] (!%p218_p2), %v2257_v3  ;;  %343 = vst [vmem:[#allocation2 + $0x98] sm:$0x3] (!%p218_p2), %v2257_v3  ;;  %v2187_v11 = vld [vmem:[%s2753_s3 + $0x158] sm:$0xff] (!%p218_p2)   ;;  %v2189_v13 = vld [vmem:[%s2753_s3 + $0x120] sm:$0xff] (!%p218_p2)  }
   0xb   : > { %v2188_v12 = vld [vmem:[%s2753_s3 + $0xd8] sm:$0xff] (!%p218_p2)   ;;  %v2190_v14 = vld [vmem:[%s2753_s3 + $0x160] sm:$0xff] (!%p218_p2)   ;;  %v2192_v16 = vld [vmem:[%s2753_s3 + $0x128] sm:$0xff] (!%p218_p2)   ;;  %vm444_vm1 = vcmask (!%p218_p2), 1046528  }
   0xc   : > { %1903 = vmatpush3.bf16.msra.mxu0 (!%p218_p2), %v2182_v6  ;;  %2059 = vmatpush3.bf16.msra.mxu1 (!%p218_p2), %v2181_v5  ;;  %v2191_v15 = vld [vmem:[%s2753_s3 + $0xe0] sm:$0xff] (!%p218_p2)   ;;  %v2193_v17 = vld [vmem:[%s2753_s3 + $0x168] sm:$0xff] (!%p218_p2)   ;;  %v2195_v19 = vld [vmem:[%s2753_s3 + $0x130] sm:$0xff] (!%p218_p2)  }
   0xd   : > { %1904 = vmatprep.subr.bf16.mxu0 %v2183_v7  ;;  %2060 = vmatprep.subr.bf16.mxu1 %v2184_v8  ;;  %s2758_s22 = smov (!%p253_p3, %s1659_s22), 1  ;;  %v2194_v18 = vld [vmem:[%s2753_s3 + $0xe8] sm:$0xff]   ;;  %v2196_v20 = vld [vmem:[%s2753_s3 + $0x170] sm:$0xff]   ;;  %v2198_v22 = vld [vmem:[%s2753_s3 + $0x138] sm:$0xff]  }
   0xe   : > { %s1848_s11 = sshll.u32 %s2758_s22, 5  ;;  %v2197_v21 = vld [vmem:[%s2753_s3 + $0xf0] sm:$0xff]   ;;  %v2395_v24 = vld [vmem:[%s2751_s1] ss:$0 sm:$0xff]  ;;  %v2199_v25 = vld [vmem:[%s2753_s3 + $0x178] sm:$0xff]   ;;  %s265_s7 = scalar_lea.vmem %s2755_s5, %s2758_s22 }
   0xf   : > { %s2383_s20 = scalar_lea.vmem %s2750_s0, %s1848_s11  ;;  %v2403_v28 = vld [vmem:[%s2752_s2] ss:$0 sm:$0xff]  ;;  %v356_v29 = vld [vmem:[#allocation2 + $0x18] sm:$0x3]  ;;  %v358_v31 = vld [vmem:[#allocation2 + $0x28] sm:$0x3]  ;;  %s2731_s29 = scalar_lea.vmem %s2754_s4, %s1848_s11 }
  0x10   : > { %1905 = vmatpush3.bf16.msra.mxu0 %v2185_v9  ;;  %2061 = vmatpush3.bf16.msra.mxu1 %v2184_v8  ;;  %v1859_v23 = vld [vmem:[%s2383_s20] sm:$0xff]   ;;  %v2200_v30 = vld [vmem:[%s2753_s3 + $0xf8] sm:$0xff]   ;;  %v1894_v32 = vld [vmem:[%s2383_s20 + $0x8] sm:$0xff]   ;;  %v384_v38 = vrot.slane %v356_v29, 1  ;;  %v385_v45 = vrot.slane %v358_v31, 1  ;;  %s268_s10 = scalar_lea.vmem %s2756_s6, %s2758_s22 }
  0x11   : > { %1906 = vmatprep.subr.bf16.mxu0 %v2186_v10  ;;  %2062 = vmatprep.subr.bf16.mxu1 %v2187_v11  ;;  %v1860_v26 = vunpack.c.l.bf16 %v1859_v23  ;;  %v1861_v27 = vunpack.c.h.bf16 %v1859_v23  ;;  %v360_v33 = vld [vmem:[#allocation2 + $0x38] sm:$0x3]  ;;  %v1864_v36 = vunpack.c.l.bf16 %v1894_v32  ;;  %v2201_v37 = vld [vmem:[%s2753_s3 + $0x40] sm:$0xff]   ;;  %v1865_v40 = vunpack.c.h.bf16 %v1894_v32  ;;  %v362_v44 = vld [vmem:[#allocation2 + $0x48] sm:$0x3] }
  0x12   : > { %v2202_v39 = vld [vmem:[%s2753_s3 + $0x80] sm:$0xff]   ;;  %v386_v46 = vrot.slane %v360_v33, 1  ;;  %v387_v51 = vrot.slane %v362_v44, 1  ;;  %v2204_v5 = vld [vmem:[%s2753_s3 + $0x48] sm:$0xff]   ;;  %v2208_v23 = vld [vmem:[%s2753_s3 + $0x90] sm:$0xff]  }
  0x13   : > { %v293_v34 = vmul.f32 %v1860_v26, %v2395_v24  ;;  %v294_v35 = vmul.f32 %v1861_v27, %v2395_v24  ;;  %v295_v43 = vmul.f32 %v1864_v36, %v2395_v24  ;;  %v296_v47 = vmul.f32 %v1865_v40, %v2395_v24  ;;  %v2203_v60 = vld [vmem:[%s2753_s3] sm:$0xff]   ;;  %v364_v26 = vld [vmem:[#allocation2 + $0x58] sm:$0x3] }
  0x14   : > { %1907 = vmatpush3.bf16.msra.mxu0 %v2188_v12  ;;  %2063 = vmatpush3.bf16.msra.mxu1 %v2187_v11  ;;  %v2206_v12 = vld [vmem:[%s2753_s3 + $0x8] sm:$0xff]   ;;  %v2211_v33 = vld [vmem:[%s2753_s3 + $0x98] sm:$0xff]  }
  0x15   : > { %1908 = vmatprep.subr.bf16.mxu0 %v2189_v13  ;;  %2064 = vmatprep.subr.bf16.mxu1 %v2190_v14  ;;  %v308_v41 = vadd.f32 %v2403_v28, %v293_v34  ;;  %v309_v42 = vadd.f32 %v2403_v28, %v294_v35  ;;  %v310_v50 = vadd.f32 %v2403_v28, %v295_v43  ;;  %v2507_v34 = vld [vmem:[#allocation2 + $0x8] sm:$0x3]  ;;  %v2212_v35 = vld [vmem:[%s2753_s3 + $0x18] sm:$0xff]  }
  0x16   : > { %v311_v52 = vadd.f32 %v2403_v28, %v296_v47  ;;  %v1896_v40 = vld [vmem:[%s2383_s20 + $0x18] sm:$0xff]  }
  0x17   : > { %v2421_v48 = vmax.f32 %v308_v41, 0.0  ;;  %v2423_v49 = vmax.f32 %v309_v42, 0.0  ;;  %v2431_v56 = vmax.f32 %v310_v50, 0.0  ;;  %v2213_v41 = vld [vmem:[%s2753_s3 + $0x60] sm:$0xff]   ;;  %v1872_v42 = vunpack.c.l.bf16 %v1896_v40  ;;  %v368_v44 = vld [vmem:[#allocation2 + $0x78] sm:$0x3] }
  0x18   : > { %1909 = vmatpush3.bf16.msra.mxu0 %v2191_v15  ;;  %2065 = vmatpush3.bf16.msra.mxu1 %v2190_v14  ;;  %v2435_v59 = vmax.f32 %v311_v52, 0.0  ;;  %v2205_v15 = vld [vmem:[%s2753_s3 + $0x88] sm:$0xff]   ;;  %v1873_v43 = vunpack.c.h.bf16 %v1896_v40 }
  0x19   : > { %1910 = vmatprep.subr.bf16.mxu0 %v2192_v16  ;;  %2066 = vmatprep.subr.bf16.mxu1 %v2193_v17  ;;  %v414_v53 = vrot.slane %v2421_v48, 7  ;;  %v415_v54 = vrot.slane %v2423_v49, 7  ;;  %v536_v55 = vpack.c.bf16 %v2423_v49, %v2421_v48  ;;  %v447_v57 = vrot.slane %v2421_v48, 1  ;;  %v370_v50 = vld [vmem:[#allocation2 + $0x88] sm:$0x3] }
  0x1a   : > { %v449_v58 = vrot.slane %v2423_v49, 1  ;;  %v451_v63 = vrot.slane %v2431_v56, 1  ;;  %v416_v0 = vrot.slane %v2431_v56, 7  ;;  %v453_v8 = vrot.slane %v2435_v59, 1 }
  0x1b   : > { %772 = vmatprep.mubr.bf16.mxu0 %v536_v55  ;;  %v2441_v61 = vsel %vm433_vm0, %v384_v38, %v414_v53  ;;  %v2444_v62 = vsel %vm433_vm0, %v385_v45, %v415_v54  ;;  %v2451_v2 = vsel %vm444_vm1, %v447_v57, %v384_v38  ;;  %v539_v9 = vpack.c.bf16 %v2435_v59, %v2431_v56 }
  0x1c   : > { %1911 = vmatpush3.bf16.msra.mxu0 %v2194_v18  ;;  %2067 = vmatpush3.bf16.msra.mxu1 %v2193_v17  ;;  %v535_v1 = vpack.c.bf16 %v2444_v62, %v2441_v61  ;;  %v2454_v4 = vsel %vm444_vm1, %v449_v58, %v385_v45  ;;  %v2460_v6 = vsel %vm444_vm1, %v451_v63, %v386_v46  ;;  %v417_v10 = vrot.slane %v2435_v59, 7  ;;  %v2207_v17 = vld [vmem:[%s2753_s3 + $0x50] sm:$0xff]   ;;  %v2215_v63 = vld [vmem:[%s2753_s3 + $0x20] sm:$0xff]  }
  0x1d   : > { %1912 = vmatprep.subr.bf16.mxu0 %v2195_v19  ;;  %2068 = vmatprep.subr.bf16.mxu1 %v2196_v20  ;;  %v537_v7 = vpack.c.bf16 %v2454_v4, %v2451_v2  ;;  %v2469_v11 = vsel %vm444_vm1, %v453_v8, %v387_v51  ;;  %v2475_v13 = vsel %vm433_vm0, %v386_v46, %v416_v0  ;;  %v1895_v18 = vld [vmem:[%s2383_s20 + $0x10] sm:$0xff]   ;;  %v388_v38 = vrot.slane %v364_v26, 1 }
  0x1e   : > { %v540_v14 = vpack.c.bf16 %v2469_v11, %v2460_v6  ;;  %v2483_v16 = vsel %vm433_vm0, %v387_v51, %v417_v10  ;;  %v2209_v19 = vld [vmem:[%s2753_s3 + $0x10] sm:$0xff]   ;;  %v2214_v51 = vld [vmem:[%s2753_s3 + $0xa0] sm:$0xff]   ;;  %v299_v52 = vmul.f32 %v1872_v42, %v2395_v24  ;;  %v300_v53 = vmul.f32 %v1873_v43, %v2395_v24  ;;  %v2223_v42 = vld [vmem:[%s2753_s3 + $0xb8] sm:$0xff]  }
  0x1f   : > { %2072 = vmatprep.mubr.bf16.mxu1 %v537_v7  ;;  %v2532_v57 = vrot.slane %v2257_v3, 1  ;;  %v390_v8 = vrot.slane %v368_v44, 1  ;;  %v2224_v44 = vld [vmem:[%s2753_s3 + $0x38] sm:$0xff]  }
  0x20   : > { %1913 = vmatpush3.bf16.msra.mxu0 %v2197_v21  ;;  %2069 = vmatpush3.bf16.msra.mxu1 %v2196_v20  ;;  %v1868_v20 = vunpack.c.l.bf16 %v1895_v18  ;;  %v1869_v21 = vunpack.c.h.bf16 %v1895_v18  ;;  %v315_v7 = vadd.f32 %v2403_v28, %v300_v53  ;;  %v2218_v18 = vld [vmem:[%s2753_s3 + $0x28] sm:$0xff]   ;;  %v2233_v53 = vld [vmem:[%s2753_s3 + $0x190] sm:$0xff]  }
  0x21   : > { %1914 = vmatprep.subr.bf16.mxu0 %v2198_v22  ;;  %2070 = vmatprep.subr.bf16.mxu1 %v2199_v25  ;;  %v538_v22 = vpack.c.bf16 %v2483_v16, %v2475_v13 }
  0x22   : > { %v297_v27 = vmul.f32 %v1868_v20, %v2395_v24  ;;  %v298_v29 = vmul.f32 %v1869_v21, %v2395_v24  ;;  %v383_v24 = vrot.slane %v2507_v34, 1 }
  0x24   : > { %1915 = vmatpush3.bf16.msra.mxu0 %v2200_v30  ;;  %2071 = vmatpush3.bf16.msra.mxu1 %v2199_v25  ;;  %v2210_v25 = vld [vmem:[%s2753_s3 + $0x58] sm:$0xff]   ;;  %v366_v30 = vld [vmem:[#allocation2 + $0x68] sm:$0x3]  ;;  %v312_v31 = vadd.f32 %v2403_v28, %v297_v27  ;;  %v313_v32 = vadd.f32 %v2403_v28, %v298_v29  ;;  %v446_v26 = vsel %vm444_vm1, %v2532_v57, %v383_v24 }
  0x25   : > { %1952 = vmatprep.subr.bf16.mxu0 %v2201_v37  ;;  %2080 = vmatprep.subr.bf16.mxu1 %v2202_v39  ;;  %v477_v40 = vpack.c.bf16 %v2451_v2, %v446_v26 }
  0x26   : > { %v2512_v36 = vmax.f32 %v312_v31, 0.0  ;;  %v2514_v37 = vmax.f32 %v313_v32, 0.0  ;;  %v2591_v32 = vrot.slane %v2257_v3, 7 }
  0x27   : > { %773 = vmatmul.mubr.bf16.vlgmr.msra.gmra.mrb[0].mxu0 %v535_v1  ;;  %2073 = vmatmul.mubr.bf16.vlgmr.msra.gmra.mrb[0].mxu1 %v540_v14  ;;  %v2216_v1 = vld [vmem:[%s2753_s3 + $0x68] sm:$0xff]  }
  0x28   : > { %1953 = vmatpush3.bf16.msra.mxu0 %v2203_v60  ;;  %780 = vmatprep.mubr.bf16.mxu0 %v539_v9  ;;  %v542_v45 = vpack.c.bf16 %v2514_v37, %v2512_v36  ;;  %v418_v46 = vrot.slane %v2512_v36, 7  ;;  %v419_v47 = vrot.slane %v2514_v37, 7  ;;  %v455_v54 = vrot.slane %v2512_v36, 1  ;;  %v2217_v14 = vld [vmem:[%s2753_s3 + $0xa8] sm:$0xff]  }
  0x29   : > { %1954 = vmatprep.subr.bf16.mxu0 %v2204_v5  ;;  %2081 = vmatpush3.bf16.msra.mxu1 %v2202_v39  ;;  %v389_v39 = vrot.slane %v366_v30, 1  ;;  %v457_v55 = vrot.slane %v2514_v37, 1  ;;  %v314_v5 = vadd.f32 %v2403_v28, %v299_v52  ;;  %v391_v9 = vrot.slane %v370_v50, 1  ;;  %v2220_v30 = vld [vmem:[%s2753_s3 + $0xb0] sm:$0xff]   ;;  %v2230_v52 = vld [vmem:[%s2753_s3 + $0x188] sm:$0xff]  }
  0x2a   : > { %2082 = vmatprep.subr.bf16.mxu1 %v2205_v15  ;;  %v2535_v58 = vsel %vm433_vm0, %v388_v38, %v418_v46  ;;  %v2552_v10 = vsel %vm444_vm1, %v455_v54, %v388_v38  ;;  %v434_v43 = vsel %vm433_vm0, %v383_v24, %v2591_v32  ;;  %v2227_v46 = vld [vmem:[%s2753_s3 + $0x180] sm:$0xff]   ;;  %v2631_v50 = vpack.c.bf16 %v2431_v56, %v2423_v49  ;;  %v2231_v49 = vld [vmem:[%s2753_s3 + $0x1d0] sm:$0xff]  }
  0x2b   : > { %v2538_v60 = vsel %vm433_vm0, %v389_v39, %v419_v47  ;;  %v475_v2 = vpack.c.bf16 %v2441_v61, %v434_v43  ;;  %v2228_v47 = vld [vmem:[%s2753_s3 + $0x1c8] sm:$0xff]   ;;  %v480_v61 = vpack.c.bf16 %v2460_v6, %v2454_v4  ;;  %v2647_v56 = vpack.c.bf16 %v2552_v10, %v2469_v11  ;;  %v2232_v6 = vld [vmem:[%s2753_s3 + $0x210] sm:$0xff]   ;;  %v2234_v11 = vld [vmem:[%s2753_s3 + $0x1d8] sm:$0xff]  }
  0x2c   : > { %1955 = vmatpush3.bf16.msra.mxu0 %v2206_v12  ;;  %v541_v0 = vpack.c.bf16 %v2538_v60, %v2535_v58  ;;  %v2555_v12 = vsel %vm444_vm1, %v457_v55, %v389_v39  ;;  %v2222_v39 = vld [vmem:[%s2753_s3 + $0x78] sm:$0xff]   ;;  %v478_v4 = vpack.c.bf16 %v2475_v13, %v2444_v62  ;;  %v482_v54 = vpack.c.bf16 %v2512_v36, %v2435_v59  ;;  %v2237_v59 = vld [vmem:[%s2753_s3 + $0x1e0] sm:$0xff]  }
  0x2d   : > { %1956 = vmatprep.subr.bf16.mxu0 %v2207_v17  ;;  %2083 = vmatpush3.bf16.msra.mxu1 %v2205_v15  ;;  %v2560_v15 = vmax.f32 %v314_v5, 0.0  ;;  %v2562_v17 = vmax.f32 %v315_v7, 0.0  ;;  %v543_v28 = vpack.c.bf16 %v2555_v12, %v2552_v10  ;;  %v2236_v13 = vld [vmem:[%s2753_s3 + $0x198] sm:$0xff]   ;;  %v481_v24 = vpack.c.bf16 %v2535_v58, %v2483_v16  ;;  %v2238_v7 = vld [vmem:[%s2753_s3 + $0x220] sm:$0xff]   ;;  %v2240_v16 = vld [vmem:[%s2753_s3 + $0x1e8] sm:$0xff]  }
  0x2e   : > { %2084 = vmatprep.subr.bf16.mxu1 %v2208_v23  ;;  %v372_v55 = vld [vmem:[#allocation2 + $0x98] sm:$0x3]  ;;  %v2243_v10 = vld [vmem:[%s2753_s3 + $0x1f0] sm:$0xff]  }
  0x2f   : > { %781 = vmatmul.mubr.bf16.gmra.mrb[4].mxu0 %v538_v22  ;;  %v420_v20 = vrot.slane %v2560_v15, 7  ;;  %v421_v21 = vrot.slane %v2562_v17, 7  ;;  %v2219_v22 = vld [vmem:[%s2753_s3 + $0x70] sm:$0xff]   ;;  %2076 = vmatprep.mubr.bf16.mxu1 %v543_v28  ;;  %v392_v36 = vrot.slane %v372_v55, 1  ;;  %v485_v58 = vpack.c.bf16 %v2560_v15, %v2514_v37  ;;  %v2247_v28 = vld [vmem:[%s2753_s3 + $0x238] sm:$0xff]  }
  0x30   : > { %1957 = vmatpush3.bf16.msra.mxu0 %v2209_v19  ;;  %788 = vmatprep.mubr.bf16.mxu0 %v542_v45  ;;  %v545_v19 = vpack.c.bf16 %v2562_v17, %v2560_v15  ;;  %v2226_v45 = vld [vmem:[%s2753_s3 + $0x200] sm:$0xff]  }
  0x31   : > { %1958 = vmatprep.subr.bf16.mxu0 %v2210_v25  ;;  %2085 = vmatpush3.bf16.msra.mxu1 %v2208_v23  ;;  %v459_v23 = vrot.slane %v2560_v15, 1  ;;  %v461_v25 = vrot.slane %v2562_v17, 1  ;;  %v2581_v27 = vsel %vm433_vm0, %v390_v8, %v420_v20  ;;  %v2584_v29 = vsel %vm433_vm0, %v391_v9, %v421_v21  ;;  %v2246_v15 = vld [vmem:[%s2753_s3 + $0x1f8] sm:$0xff]  }
  0x32   : > { %2086 = vmatprep.subr.bf16.mxu1 %v2211_v33  ;;  %v484_v37 = vpack.c.bf16 %v2581_v27, %v2538_v60  ;;  %v2248_v60 = vld [vmem:[%s2753_s3 + $0x1b8] sm:$0xff]   ;;  %v1145_v20 = vpack.c.bf16 %v2257_v3, %v2562_v17 }
  0x33   : > { %v460_v31 = vsel %vm444_vm1, %v459_v23, %v390_v8  ;;  %v2596_v34 = vsel %vm444_vm1, %v461_v25, %v391_v9  ;;  %v2242_v8 = vld [vmem:[%s2753_s3 + $0x1a8] sm:$0xff]  }
  0x34   : > { %1959 = vmatpush3.bf16.msra.mxu0 %v2212_v35  ;;  %v2221_v35 = vld [vmem:[%s2753_s3 + $0x30] sm:$0xff]   ;;  %v546_v38 = vpack.c.bf16 %v2596_v34, %v460_v31  ;;  %v486_v62 = vpack.c.bf16 %v460_v31, %v2555_v12  ;;  %v2241_v9 = vld [vmem:[%s2753_s3 + $0x228] sm:$0xff]  }
  0x35   : > { %1960 = vmatprep.subr.bf16.mxu0 %v2213_v41  ;;  %2087 = vmatpush3.bf16.msra.mxu1 %v2211_v33  ;;  %v544_v33 = vpack.c.bf16 %v2584_v29, %v2581_v27  ;;  %v476_v41 = vpack.c.bf16 %v2421_v48, %v2257_v3  ;;  %v2225_v48 = vld [vmem:[%s2753_s3 + $0x1c0] sm:$0xff]   ;;  %v2245_v12 = vld [vmem:[%s2753_s3 + $0x1b0] sm:$0xff]  }
  0x36   : > { %2088 = vmatprep.subr.bf16.mxu1 %v2214_v51  ;;  %2077 = vmatmul.mubr.bf16.gmra.mrb[4].mxu1 %v546_v38 }
  0x37   : > { %789 = vmatmul.mubr.bf16.gmra.mrb[8].mxu0 %v541_v0  ;;  %2096 = vmatprep.mubr.bf16.mxu1 %v477_v40  ;;  %v443_v0 = vsel %vm433_vm0, %v392_v36, %v2591_v32 }
  0x38   : > { %1961 = vmatpush3.bf16.msra.mxu0 %v2215_v63  ;;  %796 = vmatprep.mubr.bf16.mxu0 %v545_v19  ;;  %v2235_v63 = vld [vmem:[%s2753_s3 + $0x218] sm:$0xff]   ;;  %v1144_v5 = vpack.c.bf16 %v443_v0, %v2584_v29 }
  0x39   : > { %1962 = vmatprep.subr.bf16.mxu0 %v2216_v1  ;;  %2089 = vmatpush3.bf16.msra.mxu1 %v2214_v51  ;;  %v2229_v51 = vld [vmem:[%s2753_s3 + $0x208] sm:$0xff]   ;;  %v2239_v1 = vld [vmem:[%s2753_s3 + $0x1a0] sm:$0xff]  }
  0x3a   : > { %2090 = vmatprep.subr.bf16.mxu1 %v2217_v14 }
  0x3c   : > { %1963 = vmatpush3.bf16.msra.mxu0 %v2218_v18  ;;  %v464_v18 = vsel %vm444_vm1, %v2532_v57, %v392_v36 }
  0x3d   : > { %1964 = vmatprep.subr.bf16.mxu0 %v2219_v22  ;;  %2091 = vmatpush3.bf16.msra.mxu1 %v2217_v14  ;;  %v2244_v14 = vld [vmem:[%s2753_s3 + $0x230] sm:$0xff]   ;;  %v1146_v19 = vpack.c.bf16 %v464_v18, %v2596_v34 }
  0x3e   : > { %2092 = vmatprep.subr.bf16.mxu1 %v2220_v30 }
  0x3f   : > { %797 = vmatmul.mubr.bf16.gmra.mrb[12].mxu0 %v544_v33 }
  0x40   : > { %1965 = vmatpush3.bf16.msra.mxu0 %v2221_v35  ;;  %1046 = vmatprep.mubr.bf16.mxu0 %v476_v41 }
  0x41   : > { %1966 = vmatprep.subr.bf16.mxu0 %v2222_v39  ;;  %2093 = vmatpush3.bf16.msra.mxu1 %v2220_v30 }
  0x42   : > { %2094 = vmatprep.subr.bf16.mxu1 %v2223_v42 }
  0x44   : > { %1967 = vmatpush3.bf16.msra.mxu0 %v2224_v44 }
  0x45   : > { %2004 = vmatprep.subr.bf16.mxu0 %v2225_v48  ;;  %2095 = vmatpush3.bf16.msra.mxu1 %v2223_v42 }
  0x46   : > { %2104 = vmatprep.subr.bf16.mxu1 %v2226_v45 }
  0x47   : > { %1047 = vmatmul.mubr.bf16.vlgmr.msra.gmra.mrb[16].mxu0 %v475_v2 }
  0x48   : > { %2005 = vmatpush3.bf16.msra.mxu0 %v2227_v46  ;;  %1054 = vmatprep.mubr.bf16.mxu0 %v2631_v50 }
  0x49   : > { %2006 = vmatprep.subr.bf16.mxu0 %v2228_v47  ;;  %2097 = vmatmul.mubr.bf16.vlgmr.msra.gmra.mrb[0].mxu1 %v480_v61 }
  0x4a   : > { %2105 = vmatpush3.bf16.msra.mxu1 %v2226_v45  ;;  %2100 = vmatprep.mubr.bf16.mxu1 %v2647_v56 }
  0x4b   : > { %2106 = vmatprep.subr.bf16.mxu1 %v2229_v51 }
  0x4c   : > { %2007 = vmatpush3.bf16.msra.mxu0 %v2230_v52 }
  0x4d   : > { %2008 = vmatprep.subr.bf16.mxu0 %v2231_v49 }
  0x4e   : > { %2107 = vmatpush3.bf16.msra.mxu1 %v2229_v51 }
  0x4f   : > { %1055 = vmatmul.mubr.bf16.gmra.mrb[20].mxu0 %v478_v4  ;;  %2108 = vmatprep.subr.bf16.mxu1 %v2232_v6 }
  0x50   : > { %2009 = vmatpush3.bf16.msra.mxu0 %v2233_v53  ;;  %1062 = vmatprep.mubr.bf16.mxu0 %v482_v54 }
  0x51   : > { %2010 = vmatprep.subr.bf16.mxu0 %v2234_v11  ;;  %2101 = vmatmul.mubr.bf16.gmra.mrb[4].mxu1 %v486_v62 }
  0x52   : > { %2109 = vmatpush3.bf16.msra.mxu1 %v2232_v6  ;;  %2120 = vmatprep.mubr.bf16.mxu1 %v480_v61 }
  0x53   : > { %2110 = vmatprep.subr.bf16.mxu1 %v2235_v63 }
  0x54   : > { %2011 = vmatpush3.bf16.msra.mxu0 %v2236_v13 }
  0x55   : > { %2012 = vmatprep.subr.bf16.mxu0 %v2237_v59 }
  0x56   : > { %2111 = vmatpush3.bf16.msra.mxu1 %v2235_v63 }
  0x57   : > { %1063 = vmatmul.mubr.bf16.gmra.mrb[24].mxu0 %v481_v24  ;;  %2112 = vmatprep.subr.bf16.mxu1 %v2238_v7 }
  0x58   : > { %2013 = vmatpush3.bf16.msra.mxu0 %v2239_v1  ;;  %1070 = vmatprep.mubr.bf16.mxu0 %v485_v58 }
  0x59   : > { %2014 = vmatprep.subr.bf16.mxu0 %v2240_v16 }
  0x5a   : > { %2113 = vmatpush3.bf16.msra.mxu1 %v2238_v7 }
  0x5b   : > { %2114 = vmatprep.subr.bf16.mxu1 %v2241_v9 }
  0x5c   : > { %2015 = vmatpush3.bf16.msra.mxu0 %v2242_v8 }
  0x5d   : > { %2016 = vmatprep.subr.bf16.mxu0 %v2243_v10 }
  0x5e   : > { %2115 = vmatpush3.bf16.msra.mxu1 %v2241_v9 }
  0x5f   : > { %1071 = vmatmul.mubr.bf16.gmra.mrb[28].mxu0 %v484_v37  ;;  %2116 = vmatprep.subr.bf16.mxu1 %v2244_v14 }
  0x60   : > { %2017 = vmatpush3.bf16.msra.mxu0 %v2245_v12  ;;  %1372 = vmatprep.mubr.bf16.mxu0 %v2631_v50 }
  0x61   : > { %2018 = vmatprep.subr.bf16.mxu0 %v2246_v15 }
  0x62   : > { %2117 = vmatpush3.bf16.msra.mxu1 %v2244_v14 }
  0x63   : > { %2118 = vmatprep.subr.bf16.mxu1 %v2247_v28 }
  0x64   : > { %2019 = vmatpush3.bf16.msra.mxu0 %v2248_v60 }
  0x66   : > { %2119 = vmatpush3.bf16.msra.mxu1 %v2247_v28 }
  0x67   : > { %1373 = vmatmul.mubr.bf16.vlgmr.msra.gmra.mrb[32].mxu0 %v478_v4 }
  0x68   : > { %1380 = vmatprep.mubr.bf16.mxu0 %v482_v54 }
  0x69   : > { %2121 = vmatmul.mubr.bf16.vlgmr.msra.gmra.mrb[0].mxu1 %v2647_v56 }
  0x6a   : > { %2124 = vmatprep.mubr.bf16.mxu1 %v486_v62 }
  0x6f   : > { %1381 = vmatmul.mubr.bf16.gmra.mrb[36].mxu0 %v481_v24 }
  0x70   : > { %1388 = vmatprep.mubr.bf16.mxu0 %v485_v58 }
  0x71   : > { %2125 = vmatmul.mubr.bf16.gmra.mrb[4].mxu1 %v1146_v19 }
  0x77   : > { %1389 = vmatmul.mubr.bf16.gmra.mrb[40].mxu0 %v484_v37 }
  0x78   : > { %1396 = vmatprep.mubr.bf16.mxu0 %v1145_v20 }
  0x7f   : > { %1397 = vmatmul.mubr.bf16.gmra.mrb[44].mxu0 %v1144_v5 }
  0xfa   : > { %v1916_v21 = vpop.f32.mrb[0].mxu0 }
  0xfb   : > { %v1917_v22 = vpop.f32.mrb[1].mxu0 }
  0xfc   : > { %v1918_v23 = vadd.f32 %v1917_v22, %v1916_v21  ;;  %v1919_v25 = vpop.f32.mrb[2].mxu0 }
  0xfd   : > { %v1920_v26 = vpop.f32.mrb[3].mxu0 }
  0xfe   : > { %v1921_v27 = vadd.f32 %v1920_v26, %v1919_v25 }
 0x102   : > { %v1922_v29 = vpop.f32.mrb[4].mxu0 }
 0x103   : > { %v1923_v30 = vpop.f32.mrb[5].mxu0 }
 0x104   : > { %v1924_v57 = vadd.f32 %v1923_v30, %v1922_v29  ;;  %v1925_v31 = vpop.f32.mrb[6].mxu0 }
 0x105   : > { %v1926_v32 = vpop.f32.mrb[7].mxu0 }
 0x106   : > { %v1927_v33 = vadd.f32 %v1926_v32, %v1925_v31 }
 0x10a   : > { %v1928_v34 = vpop.f32.mrb[8].mxu0 }
 0x10b   : > { %v1929_v35 = vpop.f32.mrb[9].mxu0 }
 0x10c   : > { %v1930_v38 = vadd.f32 %v1929_v35, %v1928_v34  ;;  %v1931_v39 = vpop.f32.mrb[10].mxu0 }
 0x10d   : > { %v1932_v3 = vpop.f32.mrb[11].mxu0 }
 0x10e   : > { %v1933_v17 = vadd.f32 %v1932_v3, %v1931_v39 }
 0x112   : > { %v1934_v40 = vpop.f32.mrb[12].mxu0 }
 0x113   : > { %v1935_v41 = vpop.f32.mrb[13].mxu0 }
 0x114   : > { %v1936_v42 = vadd.f32 %v1935_v41, %v1934_v40  ;;  %v1937_v43 = vpop.f32.mrb[14].mxu0 }
 0x115   : > { %v1938_v44 = vpop.f32.mrb[15].mxu0 }
 0x116   : > { %v1939_v48 = vadd.f32 %v1938_v44, %v1937_v43 }
 0x11a   : > { %v1968_v2 = vpop.f32.mrb[16].mxu0 }
 0x11b   : > { %v1969_v45 = vpop.f32.mrb[17].mxu0 }
 0x11c   : > { %v1970_v46 = vadd.f32 %v1969_v45, %v1968_v2  ;;  %v1971_v47 = vpop.f32.mrb[18].mxu0 }
 0x11d   : > { %v1972_v50 = vpop.f32.mrb[19].mxu0 }
 0x11e   : > { %v2131_v61 = vadd.f32 %v1970_v46, %v1918_v23  ;;  %v1973_v51 = vadd.f32 %v1972_v50, %v1971_v47 }
 0x120   : > { %v2137_v52 = vadd.f32 %v1973_v51, %v1921_v27 }
 0x122   : > { %v1974_v49 = vpop.f32.mrb[20].mxu0 }
 0x123   : > { %v1975_v56 = vpop.f32.mrb[21].mxu0 }
 0x124   : > { %v1976_v4 = vadd.f32 %v1975_v56, %v1974_v49  ;;  %v1977_v6 = vpop.f32.mrb[22].mxu0 }
 0x125   : > { %v1978_v53 = vpop.f32.mrb[23].mxu0 }
 0x126   : > { %v2128_v11 = vadd.f32 %v1976_v4, %v1924_v57  ;;  %v1979_v54 = vadd.f32 %v1978_v53, %v1977_v6 }
 0x128   : > { %v2134_v62 = vadd.f32 %v1979_v54, %v1927_v33 }
 0x12a   : > { %v1980_v13 = vpop.f32.mrb[24].mxu0 }
 0x12b   : > { %v1981_v55 = vpop.f32.mrb[25].mxu0 }
 0x12c   : > { %v1982_v63 = vadd.f32 %v1981_v55, %v1980_v13  ;;  %v1983_v59 = vpop.f32.mrb[26].mxu0 }
 0x12d   : > { %v1984_v36 = vpop.f32.mrb[27].mxu0 }
 0x12e   : > { %v2143_v24 = vadd.f32 %v1982_v63, %v1930_v38  ;;  %v1985_v0 = vadd.f32 %v1984_v36, %v1983_v59 }
 0x130   : > { %v2149_v1 = vadd.f32 %v1985_v0, %v1933_v17 }
 0x132   : > { %v1986_v5 = vpop.f32.mrb[28].mxu0 }
 0x133   : > { %v1987_v7 = vpop.f32.mrb[29].mxu0 }
 0x134   : > { %v1988_v16 = vadd.f32 %v1987_v7, %v1986_v5  ;;  %v1989_v58 = vpop.f32.mrb[30].mxu0 }
 0x135   : > { %v1990_v8 = vpop.f32.mrb[31].mxu0 }
 0x136   : > { %v2722_v9 = vadd.f32 %v1988_v16, %v1936_v42  ;;  %v1991_v10 = vadd.f32 %v1990_v8, %v1989_v58 }
 0x138   : > { %v2724_v37 = vadd.f32 %v1991_v10, %v1939_v48 }
 0x13a   : > { %v2020_v12 = vpop.f32.mrb[32].mxu0 }
 0x13b   : > { %v2021_v14 = vpop.f32.mrb[33].mxu0 }
 0x13c   : > { %v2022_v15 = vadd.f32 %v2021_v14, %v2020_v12  ;;  %v2023_v60 = vpop.f32.mrb[34].mxu0  ;;  %v2122_v18 = vpop.f32.mrb[0].mxu1 }
 0x13d   : > { %v2024_v28 = vpop.f32.mrb[35].mxu0  ;;  %v1439_v21 = vpop.f32.mrb[1].mxu1 }
 0x13e   : > { %v2132_v19 = vadd.f32 %v2131_v61, %v2022_v15  ;;  %v2025_v20 = vadd.f32 %v2024_v28, %v2023_v60  ;;  %v2123_v23 = vpop.f32.mrb[2].mxu1 }
 0x13f   : > { %v1442_v26 = vpop.f32.mrb[3].mxu1 }
 0x140   : > { %v2133_v22 = vadd.f32 %v2132_v19, %v1439_v21  ;;  %v2138_v25 = vadd.f32 %v2137_v52, %v2025_v20 }
 0x142   : > { %v2139_v27 = vadd.f32 %v2138_v25, %v1442_v26  ;;  %v2026_v29 = vpop.f32.mrb[36].mxu0  ;;  %v1532_v30 = vmul.f32 %v2133_v22, %v2133_v22 }
 0x143   : > { %v2027_v57 = vpop.f32.mrb[37].mxu0 }
 0x144   : > { %v1877_v31 = vpack.c.bf16 %v2139_v27, %v2133_v22  ;;  %v1518_v32 = vadd.f32 %v2139_v27, %v2133_v22  ;;  %v1533_v33 = vmul.f32 %v2139_v27, %v2139_v27  ;;  %v2028_v34 = vadd.f32 %v2027_v57, %v2026_v29  ;;  %v2029_v35 = vpop.f32.mrb[38].mxu0  ;;  %v2126_v3 = vpop.f32.mrb[4].mxu1 }
 0x145   : > { %v2030_v38 = vpop.f32.mrb[39].mxu0  ;;  %v1455_v41 = vpop.f32.mrb[5].mxu1 }
 0x146   : > { %1878 = vst [vmem:[%s2731_s29] sm:$0xff] %v1877_v31   ;;  %v1540_v39 = vadd.f32 %v1533_v33, %v1532_v30  ;;  %v2129_v17 = vadd.f32 %v2128_v11, %v2028_v34  ;;  %v2031_v40 = vadd.f32 %v2030_v38, %v2029_v35  ;;  %v2127_v43 = vpop.f32.mrb[6].mxu1 }
 0x147   : > { %v1458_v48 = vpop.f32.mrb[7].mxu1 }
 0x148   : > { %v2130_v42 = vadd.f32 %v2129_v17, %v2122_v18  ;;  %v2135_v44 = vadd.f32 %v2134_v62, %v2031_v40 }
 0x14a   : > { %v1519_v2 = vadd.f32 %v2130_v42, %v1518_v32  ;;  %v1534_v45 = vmul.f32 %v2130_v42, %v2130_v42  ;;  %v2136_v46 = vadd.f32 %v2135_v44, %v2123_v23  ;;  %v2032_v47 = vpop.f32.mrb[40].mxu0 }
 0x14b   : > { %v2033_v50 = vpop.f32.mrb[41].mxu0 }
 0x14c   : > { %v1541_v61 = vadd.f32 %v1540_v39, %v1534_v45  ;;  %v1882_v51 = vpack.c.bf16 %v2136_v46, %v2130_v42  ;;  %v1520_v52 = vadd.f32 %v2136_v46, %v1519_v2  ;;  %v1535_v49 = vmul.f32 %v2136_v46, %v2136_v46  ;;  %v2035_v56 = vpop.f32.mrb[42].mxu0 }
 0x14d   : > { %v2034_v4 = vadd.f32 %v2033_v50, %v2032_v47  ;;  %v2036_v6 = vpop.f32.mrb[43].mxu0 }
 0x14e   : > { %1897 = vst [vmem:[%s2731_s29 + $0x8] sm:$0xff] %v1882_v51   ;;  %v1542_v53 = vadd.f32 %v1541_v61, %v1535_v49  ;;  %v2037_v11 = vadd.f32 %v2036_v6, %v2035_v56 }
 0x14f   : > { %v2144_v54 = vadd.f32 %v2143_v24, %v2034_v4 }
 0x150   : > { %v2150_v13 = vadd.f32 %v2149_v1, %v2037_v11 }
 0x151   : > { %v2145_v62 = vadd.f32 %v2144_v54, %v1455_v41 }
 0x152   : > { %v2151_v55 = vadd.f32 %v2150_v13, %v1458_v48  ;;  %v2038_v63 = vpop.f32.mrb[44].mxu0 }
 0x153   : > { %v1521_v59 = vadd.f32 %v2145_v62, %v1520_v52  ;;  %v1536_v36 = vmul.f32 %v2145_v62, %v2145_v62  ;;  %v2039_v0 = vpop.f32.mrb[45].mxu0 }
 0x154   : > { %v1887_v5 = vpack.c.bf16 %v2151_v55, %v2145_v62  ;;  %v1537_v7 = vmul.f32 %v2151_v55, %v2151_v55  ;;  %v2040_v16 = vadd.f32 %v2039_v0, %v2038_v63  ;;  %v2041_v58 = vpop.f32.mrb[46].mxu0 }
 0x155   : > { %v1543_v8 = vadd.f32 %v1542_v53, %v1536_v36  ;;  %v1522_v10 = vadd.f32 %v2151_v55, %v1521_v59  ;;  %v2042_v12 = vpop.f32.mrb[47].mxu0 }
 0x156   : > { %1898 = vst [vmem:[%s2731_s29 + $0x10] sm:$0xff] %v1887_v5   ;;  %v2141_v14 = vadd.f32 %v2722_v9, %v2040_v16  ;;  %v2043_v15 = vadd.f32 %v2042_v12, %v2041_v58 }
 0x157   : > { %v1544_v24 = vadd.f32 %v1543_v8, %v1537_v7 }
 0x158   : > { %v2142_v1 = vadd.f32 %v2141_v14, %v2126_v3  ;;  %v2147_v60 = vadd.f32 %v2724_v37, %v2043_v15 }
 0x15a   : > { %v1523_v28 = vadd.f32 %v2142_v1, %v1522_v10  ;;  %v1538_v18 = vmul.f32 %v2142_v1, %v2142_v1  ;;  %v2148_v19 = vadd.f32 %v2147_v60, %v2127_v43 }
 0x15c   : > { %v1545_v20 = vadd.f32 %v1544_v24, %v1538_v18  ;;  %v1892_v21 = vpack.c.bf16 %v2148_v19, %v2142_v1  ;;  %v1524_v22 = vadd.f32 %v2148_v19, %v1523_v28  ;;  %v1539_v23 = vmul.f32 %v2148_v19, %v2148_v19 }
 0x15e   : > { %1899 = vst [vmem:[%s2731_s29 + $0x18] sm:$0xff] %v1892_v21   ;;  %v1525_v25 = vrot.slane %v1524_v22, 4  ;;  %v1546_v26 = vadd.f32 %v1545_v20, %v1539_v23 }
 0x160   : > { %v1526_v27 = vadd.f32 %v1525_v25, %v1524_v22  ;;  %v1547_v29 = vrot.slane %v1546_v26, 4 }
 0x162   : > { %v1527_v9 = vrot.slane %v1526_v27, 2  ;;  %v1548_v30 = vadd.f32 %v1547_v29, %v1546_v26 }
 0x164   : > { %v1528_v57 = vadd.f32 %v1527_v9, %v1526_v27  ;;  %v1549_v31 = vrot.slane %v1548_v30, 2 }
 0x166   : > { %v1529_v32 = vrot.slane %v1528_v57, 1  ;;  %v1550_v37 = vadd.f32 %v1549_v31, %v1548_v30 }
 0x168   : > { %v1530_v33 = vadd.f32 %v1529_v32, %v1528_v57  ;;  %v1551_v34 = vrot.slane %v1550_v37, 1 }
 0x16a   : > { %1531 = vst [vmem:[%s265_s7] sm:$0x1] %v1530_v33  ;;  %v1552_v35 = vadd.f32 %v1551_v34, %v1550_v37 }
 0x16c   : > { %1553 = vst [vmem:[%s268_s10] sm:$0x1] %v1552_v35 }
 0x16d PF: > { %s17_s21 = sadd.s32 1, %s2255_s21  }
 0x16e   : > { %p14_p4 = scmp.ge.s32.totalorder %s17_s21, 4  }
 0x170   :  { %16 = sbr.rel (!%p14_p4) target bundleno = 1 (0x1), region = 93 }

// kernel: bottleneck_forward.13
= control target key start
LH: loop header
LB: loop body
LE: loop exit
PB: predicated region body
PF: predicated region fallthrough
CT: control target
= control target key end

     0   :  { %12 = vsyncpa [#allocation3], 0  ;;  %s1074_s0 = inlined_call_operand.vmem [shape: bf16[2,64,128], index: 0, kind: input, shape index: {}]   ;;  %s1075_s1 = inlined_call_operand.vmem [shape: f32[1,1,128], index: 1, kind: input, shape index: {}]   ;;  %s1076_s2 = inlined_call_operand.vmem [shape: f32[1,1,128], index: 2, kind: input, shape index: {}]   ;;  %s1077_s3 = inlined_call_operand.vmem [shape: f32[2,1,128], index: 3, kind: input, shape index: {}]   ;;  %s1078_s4 = inlined_call_operand.vmem [shape: bf16[2,64,128], index: 4, kind: input, shape index: {}]   ;;  %s1079_s5 = inlined_call_operand.vmem [shape: f32[1,1,128], index: 5, kind: input, shape index: {}]   ;;  %s1080_s6 = inlined_call_operand.vmem [shape: f32[1,1,128], index: 6, kind: input, shape index: {}]   ;;  %s1081_s7 = inlined_call_operand.hbm [shape: f32[2,64,128], index: 7, kind: output, shape index: {}]  }
   0x1   :  { %14 = vsyncpa [#allocation3 + $0x1], 0  ;;  %s860_s24 = smov 0   ;;  %s862_s25 = smov 0  }
   0x2   :  { %s864_s26 = smov 0   ;;  %s866_s27 = smov 0  }
   0x3   :  { %s868_s28 = smov 0   ;;  %s870_s29 = smov 0  }
   0x4 LB: > { %s619_s30 = sadd.s32 4294967295, %s815_s29   ;;  %s620_s8 = sadd.s32 4294967294, %s815_s29   ;;  %s815_s29 = sphi %s870_s29, %s20_s29   ;;  %s811_s28 = sphi %s868_s28, %s1088_s28   ;;  %s807_s27 = sphi %s866_s27, %s1087_s27   ;;  %s803_s26 = sphi %s864_s26, %s1086_s26   ;;  %s799_s25 = sphi %s862_s25, %s1085_s25   ;;  %s795_s24 = sphi %s860_s24, %s1084_s24  }
   0x5   : > { %s32_s9 = sadd.s32 1, %s811_s28  ;;  %s207_s10 = sadd.s32 1, %s803_s26 }
   0x6   : > { %p34_p0 = scmp.ge.s32.totalorder %s32_s9, 2  ;;  %p217_p1 = scmp.ne.s32.totalorder %s803_s26, %s799_s25 }
   0x7   : > { %p218_p2 = scmp.eq.s32.totalorder %s619_s30, 1  ;;  %p223_p3 = scmp.ne.s32.totalorder %s799_s25, %s795_s24 }
   0x8   : > { %s1090_s9 = smov (%p34_p0, %s32_s9), 0  ;;  %p224_p5 = scmp.eq.s32.totalorder %s620_s8, 1 }
   0x9   : > { %p900_p4 = por %p218_p2, %p217_p1  ;;  %s202_s12 = ssub.s32 %s811_s28, %s1090_s9 }
   0xa   : > { %p623_p6 = scmp.ge.s32.totalorder %s815_s29, 1  ;;  %p205_p7 = scmp.eq.s32.totalorder %s202_s12, 0 }
   0xb   : > { %p907_p8 = por %p224_p5, %p223_p3  ;;  %p286_p9 = scmp.lt.s32.totalorder %s815_s29, 3 }
   0xc   : > { %s913_s14 = scalar_select %p205_p7, %s803_s26, %s207_s10  }
   0xd   : > { %p287_p10 = pnand %p623_p6, %p286_p9 }
   0xe   : > { %p335_p11 = scmp.lt.s32.totalorder (!%p287_p10), %s807_s27, 1  ;;  %v933_v0 = vld [vmem:[%s1075_s1] ss:$0 sm:$0xff] (!%p287_p10)  ;;  %s641_s8 = sshll.u32 (!%p287_p10), %s807_s27, 10 }
   0xf   : > { %290 = sbr.rel (%p287_p10) target bundleno = 70 (0x46), region = 48  ;;  %v938_v1 = vld [vmem:[%s1079_s5] ss:$0 sm:$0xff] (!%p287_p10) }
  0x10   : > { %v947_v10 = vld [vmem:[%s1076_s2] ss:$0 sm:$0xff] (!%p287_p10) }
  0x11   : > { %v952_v11 = vld [vmem:[%s1080_s6] ss:$0 sm:$0xff] (!%p287_p10) }
  0x16   : > { %s917_s15 = scalar_select %p335_p11, %s807_s27, 1 }
  0x17   : > { %s817_s27 = smov [#allocation2]  }
  0x18   : > { %s639_s16 = sshll.u32 %s917_s15, 5  ;;  %s346_s23 = scalar_lea.vmem %s1077_s3, %s917_s15 }
  0x19   : > { %s923_s19 = scalar_lea.vmem %s1074_s0, %s639_s16  ;;  %s928_s22 = scalar_lea.vmem %s1078_s4, %s639_s16  ;;  %v973_v30 = vld [vmem:[%s346_s23] ss:$0 sm:$0xff] }
  0x1a   : > { %v643_v2 = vld [vmem:[%s923_s19] sm:$0xff]   ;;  %v674_v4 = vld [vmem:[%s923_s19 + $0x8] sm:$0xff]   ;;  %v675_v24 = vld [vmem:[%s923_s19 + $0x10] sm:$0xff]   ;;  %s331_s15 = sand.u32 1, %s799_s25   ;;  %s1022_s16 = scalar_lea.hbm %s1081_s7, %s641_s8 }
  0x1b   : > { %v659_v3 = vld [vmem:[%s928_s22] sm:$0xff]   ;;  %v644_v5 = vunpack.c.l.bf16 %v643_v2  ;;  %v645_v7 = vunpack.c.h.bf16 %v643_v2  ;;  %v677_v9 = vld [vmem:[%s928_s22 + $0x8] sm:$0xff]   ;;  %v648_v12 = vunpack.c.l.bf16 %v674_v4  ;;  %v649_v14 = vunpack.c.h.bf16 %v674_v4  ;;  %v678_v25 = vld [vmem:[%s928_s22 + $0x10] sm:$0xff]   ;;  %s624_s30 = sshll.u32 %s331_s15, 6  ;;  %s1028_s17 = scalar_lea.sflag [#allocation3], %s331_s15 }
  0x1c   : > { %v660_v6 = vunpack.c.l.bf16 %v659_v3  ;;  %v661_v8 = vunpack.c.h.bf16 %v659_v3  ;;  %v664_v13 = vunpack.c.l.bf16 %v677_v9  ;;  %v665_v15 = vunpack.c.h.bf16 %v677_v9  ;;  %v676_v51 = vld [vmem:[%s923_s19 + $0x18] sm:$0xff]   ;;  %s995_s19 = scalar_lea.vmem [#allocation2], %s624_s30  ;;  %s741_s20 = sshll.u32 %s817_s27, 4  ;;  %s742_s20 = int_to_ptr.vmem [resolvable:$false] %s741_s20 }
  0x1d   : > { %v381_v16 = vmul.f32 %v644_v5, %v933_v0  ;;  %v382_v18 = vmul.f32 %v645_v7, %v933_v0  ;;  %v383_v20 = vmul.f32 %v648_v12, %v933_v0  ;;  %v384_v22 = vmul.f32 %v649_v14, %v933_v0  ;;  %v679_v56 = vld [vmem:[%s928_s22 + $0x18] sm:$0xff]   ;;  %s513_s22 = sshll.u32 %s995_s19, 4  ;;  %s743_s21 = scalar_lea.vmem %s742_s20, 2048  ;;  %s1017_s22 = int_to_ptr.vmem [resolvable:$true] %s513_s22 }
  0x1e   : > { %v435_v17 = vmul.f32 %v660_v6, %v938_v1  ;;  %v436_v19 = vmul.f32 %v661_v8, %v938_v1  ;;  %v437_v21 = vmul.f32 %v664_v13, %v938_v1  ;;  %v438_v23 = vmul.f32 %v665_v15, %v938_v1  ;;  %s737_s18 = scalar_lea.vmem %s1017_s22, 1024  ;;  %p744_p1 = scmp.lt.s32.totalorder %s1017_s22, %s742_s20 }
  0x1f   : > { %v396_v26 = vadd.f32 %v947_v10, %v381_v16  ;;  %v397_v28 = vadd.f32 %v947_v10, %v382_v18  ;;  %v398_v31 = vadd.f32 %v947_v10, %v383_v20  ;;  %v399_v33 = vadd.f32 %v947_v10, %v384_v22  ;;  %p738_p12 = scmp.ne.s32.totalorder %s1017_s22, %s737_s18  ;;  %p745_p2 = scmp.lt.s32.totalorder %s743_s21, %s737_s18 }
  0x20   : > { %v450_v27 = vadd.f32 %v952_v11, %v435_v17  ;;  %v451_v29 = vadd.f32 %v952_v11, %v436_v19  ;;  %v452_v32 = vadd.f32 %v952_v11, %v437_v21  ;;  %v453_v34 = vadd.f32 %v952_v11, %v438_v23 }
  0x21   : > { %v404_v35 = vmax.f32 %v396_v26, 0.0  ;;  %v405_v36 = vmax.f32 %v397_v28, 0.0  ;;  %v652_v37 = vunpack.c.l.bf16 %v675_v24  ;;  %v668_v38 = vunpack.c.l.bf16 %v678_v25  ;;  %p739_p13 = pnand %p738_p12, %p900_p4  ;;  %p746_p3 = por %p745_p2, %p744_p1 }
  0x22   : > { %v406_v39 = vmax.f32 %v398_v31, 0.0  ;;  %v407_v40 = vmax.f32 %v399_v33, 0.0  ;;  %v653_v41 = vunpack.c.h.bf16 %v675_v24  ;;  %v669_v42 = vunpack.c.h.bf16 %v678_v25 }
  0x23   : > { %v465_v43 = vmul.f32 %v973_v30, %v404_v35  ;;  %v466_v44 = vmul.f32 %v973_v30, %v405_v36  ;;  %v385_v45 = vmul.f32 %v652_v37, %v933_v0  ;;  %v439_v46 = vmul.f32 %v668_v38, %v938_v1  ;;  %p740_p0 = pneg %p739_p13 }
  0x24   : > { %v467_v47 = vmul.f32 %v973_v30, %v406_v39  ;;  %v468_v48 = vmul.f32 %v973_v30, %v407_v40  ;;  %v386_v49 = vmul.f32 %v653_v41, %v933_v0  ;;  %v440_v50 = vmul.f32 %v669_v42, %v938_v1 }
  0x25   : > { %v473_v52 = vadd.f32 %v465_v43, %v450_v27  ;;  %v474_v53 = vadd.f32 %v466_v44, %v451_v29  ;;  %v400_v54 = vadd.f32 %v947_v10, %v385_v45  ;;  %v454_v55 = vadd.f32 %v952_v11, %v439_v46  ;;  %p747_p5 = pnand %p746_p3, %p740_p0 }
  0x26   : > { %v475_v57 = vadd.f32 %v467_v47, %v452_v32  ;;  %v476_v58 = vadd.f32 %v468_v48, %v453_v34  ;;  %v401_v59 = vadd.f32 %v947_v10, %v386_v49  ;;  %v455_v60 = vadd.f32 %v952_v11, %v440_v50 }
  0x27   : > { %v481_v61 = vmax.f32 %v473_v52, 0.0  ;;  %v482_v62 = vmax.f32 %v474_v53, 0.0  ;;  %v408_v63 = vmax.f32 %v400_v54, 0.0  ;;  %v656_v2 = vunpack.c.l.bf16 %v676_v51 }
  0x28   : > { %v483_v3 = vmax.f32 %v475_v57, 0.0  ;;  %v484_v4 = vmax.f32 %v476_v58, 0.0  ;;  %v409_v5 = vmax.f32 %v401_v59, 0.0  ;;  %v672_v6 = vunpack.c.l.bf16 %v679_v56 }
  0x29   : > { %489 = vst [vmem:[%s995_s19] sm:$0xff] %v481_v61  ;;  %490 = vst [vmem:[%s995_s19 + $0x8] sm:$0xff] %v482_v62  ;;  %v469_v7 = vmul.f32 %v973_v30, %v408_v63  ;;  %v387_v8 = vmul.f32 %v656_v2, %v933_v0  ;;  %v657_v9 = vunpack.c.h.bf16 %v676_v51  ;;  %v673_v12 = vunpack.c.h.bf16 %v679_v56 }
  0x2a   : > { %491 = vst [vmem:[%s995_s19 + $0x10] sm:$0xff] %v483_v3  ;;  %492 = vst [vmem:[%s995_s19 + $0x18] sm:$0xff] %v484_v4  ;;  %v470_v13 = vmul.f32 %v973_v30, %v409_v5  ;;  %v441_v14 = vmul.f32 %v672_v6, %v938_v1 }
  0x2b   : > { %v477_v15 = vadd.f32 %v469_v7, %v454_v55  ;;  %v402_v16 = vadd.f32 %v947_v10, %v387_v8  ;;  %v388_v17 = vmul.f32 %v657_v9, %v933_v0  ;;  %v442_v18 = vmul.f32 %v673_v12, %v938_v1 }
  0x2c   : > { %v478_v19 = vadd.f32 %v470_v13, %v455_v60  ;;  %v456_v22 = vadd.f32 %v952_v11, %v441_v14 }
  0x2d   : > { %v485_v20 = vmax.f32 %v477_v15, 0.0  ;;  %v410_v21 = vmax.f32 %v402_v16, 0.0  ;;  %v403_v23 = vadd.f32 %v947_v10, %v388_v17  ;;  %v457_v0 = vadd.f32 %v952_v11, %v442_v18 }
  0x2e   : > { %v486_v24 = vmax.f32 %v478_v19, 0.0 }
  0x2f   : > { %493 = vst [vmem:[%s995_s19 + $0x20] sm:$0xff] %v485_v20  ;;  %v471_v25 = vmul.f32 %v973_v30, %v410_v21  ;;  %v411_v26 = vmax.f32 %v403_v23, 0.0 }
  0x30   : > { %494 = vst [vmem:[%s995_s19 + $0x28] sm:$0xff] %v486_v24 }
  0x31   : > { %v479_v1 = vadd.f32 %v471_v25, %v456_v22  ;;  %v472_v27 = vmul.f32 %v973_v30, %v411_v26 }
  0x33   : > { %v487_v28 = vmax.f32 %v479_v1, 0.0  ;;  %v480_v29 = vadd.f32 %v472_v27, %v457_v0 }
  0x35   : > { %495 = vst [vmem:[%s995_s19 + $0x30] sm:$0xff] %v487_v28  ;;  %v488_v10 = vmax.f32 %v480_v29, 0.0 }
  0x37   : > { %496 = vst [vmem:[%s995_s19 + $0x38] sm:$0xff] %v488_v10 }
  0x38   : > { %750 = shalt.err (!%p747_p5)
}
  0x39   : > { %s751_s23 = scalar_lea.hbm %s1022_s16, 1024  ;;  %s755_s19 = scalar_lea.hbm %s1081_s7, 2048 }
  0x3a   : > { %p752_p6 = scmp.ne.s32.totalorder %s1022_s16, %s751_s23  ;;  %p756_p10 = scmp.lt.u32.totalorder %s1022_s16, %s1081_s7 }
  0x3b   : > { %p757_p11 = scmp.lt.u32.totalorder %s755_s19, %s751_s23  ;;  %p759_p13 = scmp.lt.u32.totalorder %s751_s23, %s1022_s16 }
  0x3c   : > { %p753_p7 = pnand %p752_p6, %p900_p4 }
  0x3d   : > { %p758_p12 = por %p757_p11, %p756_p10 }
  0x3e   : > { %p754_p9 = pneg %p753_p7 }
  0x3f   : > { %p760_p0 = por %p759_p13, %p758_p12 }
  0x41   : > { %p761_p1 = pnand %p760_p0, %p754_p9 }
  0x43   : > { %764 = shalt.err (!%p761_p1)
}
  0x44   : > { %s818_s12 = smov 128   ;;  %s819_s18 = smov 8  }
  0x45   : > { %680 = dma.vmem_to_hbm [thread:$0]  (%p900_p4), %s1017_s22, 1024, %s1022_s16, %s1028_s17, %s818_s12, %s818_s12, %s819_s18  }
  0x46 PF: > { %p686_p2 = scmp.ge.s32.totalorder %s815_s29, 2  ;;  %s528_s27 = sand.u32 1, %s795_s24  }
  0x47   : > { %s529_s20 = scalar_lea.sflag [#allocation3], %s528_s27 }
  0x48   : > { %p683_p3 = pnand %p686_p2, %p907_p8 }
  0x4a   : > { %790 = dma.done.wait (!%p683_p3), %s529_s20, 1024  }
  0x4b   : > { %792 = vsyncadd (!%p683_p3), %s529_s20, 4294966272  ;;  %s20_s29 = sadd.s32 1, %s815_s29   ;;  %s1084_s24 = smov %s799_s25 }
  0x4c   : > { %p17_p5 = scmp.ge.s32.totalorder %s20_s29, 4   ;;  %s1085_s25 = smov %s803_s26 }
  0x4d   : > { %s1086_s26 = smov %s913_s14  ;;  %s1087_s27 = smov %s811_s28 }
  0x4e   : > { %s1088_s28 = smov %s1090_s9  ;;  %19 = sbr.rel (!%p17_p5) target bundleno = 4 (0x4), region = 89 }
  0x55   :  { %534 = vsyncpa [#allocation3], 1 }
  0x56   :  { %536 = vsyncpa [#allocation3 + $0x1], 1 }

</bundles_post_ra>
